<compile_context>
chip_gen: v6e
topology: v6e:2x2x1
jax: 0.10.0
libtpu: 0.0.40
codegen_flags: <defaults>
</compile_context>

<pallas_src>
import functools
import math

import jax
import jax.numpy as jnp
from jax.experimental import pallas as pl
from jax.experimental.pallas import tpu as pltpu


# ------------------------------ fused kernel --------------------------------
def _decoder_layer_kernel(vis_ref, vpos_ref, txt_ref, tpos_ref, mask_ref,
                          ln_g_ref, ln_b_ref,
                          sa_win_ref, sa_bin_ref, sa_wo_ref, sa_bo_ref,
                          ca_win_ref, ca_bin_ref, ca_wo_ref, ca_bo_ref,
                          f_w1_ref, f_b1_ref, f_g_ref, f_beta_ref,
                          f_w2_ref, f_b2_ref,
                          o_ref, ctx_ref, *, nhead):
    f32, bf16 = jnp.float32, jnp.bfloat16
    tq = o_ref.shape[0]
    row0 = pl.multiple_of(pl.program_id(1) * tq, tq)     # query-tile row offset

    def layer_norm(z, g, b):                              # f32 VPU work
        mu = jnp.mean(z, axis=-1, keepdims=True)
        zc = z - mu
        var = jnp.mean(zc * zc, axis=-1, keepdims=True)
        return zc * jax.lax.rsqrt(var + 1e-5) * g + b

    def mha(q_in, k_in, v_in, w_in_ref, b_in_ref, wo_ref, bo_ref, add_mask):
        # Whole-E contraction / whole-E output projections; bf16 operands,
        # f32 accumulation, f32 bias add.
        q = jnp.dot(q_in.astype(bf16), w_in_ref[0],
                    preferred_element_type=f32) + b_in_ref[0]
        k = jnp.dot(k_in.astype(bf16), w_in_ref[1],
                    preferred_element_type=f32) + b_in_ref[1]
        v = jnp.dot(v_in.astype(bf16), w_in_ref[2],
                    preferred_element_type=f32) + b_in_ref[2]
        e = q.shape[-1]
        d = e // nhead
        scale = 1.0 / math.sqrt(d)
        for h in range(nhead):                 # static unroll, nhead is small
            qh = (q[:, h * d:(h + 1) * d] * scale).astype(bf16)
            kh = k[:, h * d:(h + 1) * d].astype(bf16)
            vh = v[:, h * d:(h + 1) * d].astype(bf16)
            s = jax.lax.dot_general(qh, kh, (((1,), (1,)), ((), ())),
                                    preferred_element_type=f32)    # (TQ, Lk)
            if add_mask is not None:
                s = s + add_mask
            s = s - jnp.max(s, axis=-1, keepdims=True)              # f32 softmax
            p = jnp.exp(s)
            p = p * pl.reciprocal(jnp.sum(p, axis=-1, keepdims=True), approx=True)
            # Head context into its column slab -> ONE Wo matmul after the loop.
            ctx_ref[:, h * d:(h + 1) * d] = jnp.dot(
                p.astype(bf16), vh, preferred_element_type=f32)
        return jnp.dot(ctx_ref[...].astype(bf16), wo_ref[...],
                       preferred_element_type=f32) + bo_ref[...]

    # Residual stream for this query tile + full-sequence view for self-attn K/V.
    x = vis_ref[pl.ds(row0, tq), :].astype(f32)            # (TQ, E)
    vis_full = vis_ref[...].astype(f32)                    # (HW, E)
    vpos_t = vpos_ref[pl.ds(row0, tq), :].astype(f32)      # (TQ, E)
    vpos_full = vpos_ref[...].astype(f32)                  # (HW, E)
    txt = txt_ref[...].astype(f32)                         # (L, E)
    tpos = tpos_ref[...].astype(f32)                       # (L, E)

    # ---- self-attention: norm1 -> MHA (no mask) -> self_attn_norm -> residual
    n1_full = layer_norm(vis_full, ln_g_ref[0], ln_b_ref[0])
    n1_tile = layer_norm(x, ln_g_ref[0], ln_b_ref[0])
    sa = mha(n1_tile + vpos_t, n1_full + vpos_full, n1_full,
             sa_win_ref, sa_bin_ref, sa_wo_ref, sa_bo_ref, None)
    x = x + layer_norm(sa, ln_g_ref[3], ln_b_ref[3])       # dropout1 = identity

    # ---- cross-attention: norm2 -> MHA(txt, pad mask) -> cross_attn_norm -> residual
    n2 = layer_norm(x, ln_g_ref[1], ln_b_ref[1])
    ca = mha(n2 + vpos_t, txt + tpos, txt,
             ca_win_ref, ca_bin_ref, ca_wo_ref, ca_bo_ref, mask_ref[...])
    x = x + layer_norm(ca, ln_g_ref[4], ln_b_ref[4])       # dropout2 = identity

    # ---- FFN: norm3 -> Linear -> ReLU -> LayerNorm(F) -> Linear -> residual
    n3 = layer_norm(x, ln_g_ref[2], ln_b_ref[2])
    h = jnp.dot(n3.astype(bf16), f_w1_ref[...],
                preferred_element_type=f32) + f_b1_ref[...]
    h = jnp.maximum(h, 0.0)
    h = layer_norm(h, f_g_ref[...], f_beta_ref[...])
    ff = jnp.dot(h.astype(bf16), f_w2_ref[...],
                 preferred_element_type=f32) + f_b2_ref[...]
    x = x + ff                                             # dropout3 = identity

    o_ref[...] = x.astype(o_ref.dtype)


# --------------------------- parameter packing -------------------------------
def _pack_params(params):
    """Pack once per stack: weight matrices in bf16 (MXU), vectors in f32."""
    f32, bf16 = jnp.float32, jnp.bfloat16
    E = params["norm1_g"].shape[0]
    F = params["ffn"]["w1"].shape[1]
    ln_g = jnp.stack([params["norm1_g"], params["norm2_g"], params["norm3_g"],
                      params["self_attn_norm_g"],
                      params["cross_attn_norm_g"]]).reshape(5, 1, E).astype(f32)
    ln_b = jnp.stack([params["norm1_b"], params["norm2_b"], params["norm3_b"],
                      params["self_attn_norm_b"],
                      params["cross_attn_norm_b"]]).reshape(5, 1, E).astype(f32)

    def attn(p):
        w_in = jnp.stack([p["wq"], p["wk"], p["wv"]]).astype(bf16)        # (3,E,E)
        b_in = jnp.stack([p["bq"], p["bk"], p["bv"]]).reshape(3, 1, E).astype(f32)
        return w_in, b_in, p["wo"].astype(bf16), p["bo"].reshape(1, E).astype(f32)

    sa = attn(params["self_attn"])
    ca = attn(params["cross_attn"])
    fp = params["ffn"]
    ffn = (fp["w1"].astype(bf16), fp["b1"].reshape(1, F).astype(f32),
           fp["ln_g"].reshape(1, F).astype(f32), fp["ln_b"].reshape(1, F).astype(f32),
           fp["w2"].astype(bf16), fp["b2"].reshape(1, E).astype(f32))
    return (ln_g, ln_b) + sa + ca + ffn


@functools.lru_cache(maxsize=None)
def _vmem_limit_bytes(default=48 * 1024 * 1024):
    # Derive the scoped VMEM limit from the hardware (v7x has only 64 MiB/TC).
    try:
        info = pltpu.get_tpu_info()
        cap = getattr(info, "vmem_capacity_bytes", None) or getattr(info, "vmem_bytes", None)
        if cap and cap > (16 << 20):
            return int(cap * 3 // 4)          # leave headroom for the runtime
    except Exception:
        pass
    return default


# ------------------------------ kernel wrappers -------------------------------
def decoder_layer_batch_major(vis_b, txt_b, vis_pos, txt_pos, add_mask, packed,
                              *, nhead, q_tile=None):
    """Batch-major entry point: vis_b (B,HW,E), txt_b (B,L,E), add_mask (B,1,L)."""
    B, HW, E = vis_b.shape
    L = txt_b.shape[1]
    assert E % nhead == 0
    if q_tile is None:
        q_tile = 128 if HW % 128 == 0 else (8 if HW % 8 == 0 else HW)
    assert HW % q_tile == 0

    vpos = vis_pos.reshape(HW, E)
    tpos = txt_pos.reshape(L, E)

    operands = (vis_b, vpos, txt_b, tpos, add_mask) + tuple(packed)

    def const_spec(a):
        # Constant index_map -> DMA'd once, stays VMEM-resident across the grid.
        return pl.BlockSpec(a.shape, lambda b, t, _n=a.ndim: (0,) * _n)

    in_specs = [
        pl.BlockSpec((None, HW, E), lambda b, t: (b, 0, 0)),   # vis (full seq, batch b)
        pl.BlockSpec((HW, E), lambda b, t: (0, 0)),            # vis_pos
        pl.BlockSpec((None, L, E), lambda b, t: (b, 0, 0)),    # txt (batch b)
        pl.BlockSpec((L, E), lambda b, t: (0, 0)),             # txt_pos
        pl.BlockSpec((None, 1, L), lambda b, t: (b, 0, 0)),    # additive pad mask
    ] + [const_spec(a) for a in operands[5:]]

    return pl.pallas_call(
        functools.partial(_decoder_layer_kernel, nhead=nhead),
        out_shape=jax.ShapeDtypeStruct((B, HW, E), vis_b.dtype),
        grid=(B, HW // q_tile),
        in_specs=in_specs,
        out_specs=pl.BlockSpec((None, q_tile, E), lambda b, t: (b, t, 0)),
        scratch_shapes=[pltpu.VMEM((q_tile, E), jnp.float32)],   # per-head ctx slab
        compiler_params=pltpu.CompilerParams(
            dimension_semantics=("parallel", "parallel"),
            vmem_limit_bytes=_vmem_limit_bytes()),
    )(*operands)


def transformer_decoder_layer(vis, txt, vis_pos, txt_pos, pad_mask, params,
                              nhead, q_tile=None):
    """(seq,B,E) interface matching the PyTorch module.  Layout conversion and
    parameter packing live here so a multi-layer stack hoists them and calls
    decoder_layer_batch_major per layer."""
    HW, B, E = vis.shape
    L = txt.shape[0]
    vis_b = jnp.transpose(vis, (1, 0, 2))                     # (B, HW, E)
    txt_b = jnp.transpose(txt, (1, 0, 2))                     # (B, L, E)
    add_mask = jnp.where(pad_mask, jnp.float32(-1e9),
                         jnp.float32(0.0)).reshape(B, 1, L)
    packed = _pack_params(params)
    out_b = decoder_layer_batch_major(vis_b, txt_b, vis_pos, txt_pos, add_mask,
                                      packed, nhead=nhead, q_tile=q_tile)
    return jnp.transpose(out_b, (1, 0, 2))                    # back to (HW, B, E)


# ------------------------- deterministic parameter init ----------------------
def init_params(key, d_model, dim_ff):
    ks = jax.random.split(key, 10)

    def w(k, shape):
        return jax.random.normal(k, shape, jnp.float32) * 0.02

    def attn(ks4):
        return {"wq": w(ks4[0], (d_model, d_model)), "bq": jnp.zeros((d_model,), jnp.float32),
                "wk": w(ks4[1], (d_model, d_model)), "bk": jnp.zeros((d_model,), jnp.float32),
                "wv": w(ks4[2], (d_model, d_model)), "bv": jnp.zeros((d_model,), jnp.float32),
                "wo": w(ks4[3], (d_model, d_model)), "bo": jnp.zeros((d_model,), jnp.float32)}

    p = {}
    for name in ["norm1", "norm2", "norm3", "self_attn_norm", "cross_attn_norm"]:
        p[name + "_g"] = jnp.ones((d_model,), jnp.float32)
        p[name + "_b"] = jnp.zeros((d_model,), jnp.float32)
    p["self_attn"] = attn(ks[0:4])
    p["cross_attn"] = attn(ks[4:8])
    p["ffn"] = {"w1": w(ks[8], (d_model, dim_ff)), "b1": jnp.zeros((dim_ff,), jnp.float32),
                "ln_g": jnp.ones((dim_ff,), jnp.float32), "ln_b": jnp.zeros((dim_ff,), jnp.float32),
                "w2": w(ks[9], (dim_ff, d_model)), "b2": jnp.zeros((d_model,), jnp.float32)}
    return p


# ------------------------------ pure-JAX reference ---------------------------
def _reference_layer(vis, txt, vis_pos, txt_pos, pad_mask, params, nhead,
                     mxu_round=False):
    """Reference forward.  mxu_round=True rounds every matmul operand to bf16
    (exactly the kernel's MXU input policy) while accumulating in f32."""
    E = vis.shape[-1]
    rd = ((lambda a: a.astype(jnp.bfloat16).astype(jnp.float32))
          if mxu_round else (lambda a: a))

    def ln(x, g, b):
        mu = jnp.mean(x, axis=-1, keepdims=True)
        xc = x - mu
        var = jnp.mean(xc * xc, axis=-1, keepdims=True)
        return xc * jax.lax.rsqrt(var + 1e-5) * g + b

    def mha(q, k, v, p, mask=None):
        Lq, B, _ = q.shape
        Lk = k.shape[0]
        d = E // nhead
        scale = 1.0 / math.sqrt(d)
        qp = jnp.einsum("lbe,ef->lbf", rd(q), rd(p["wq"])) + p["bq"]
        kp = jnp.einsum("lbe,ef->lbf", rd(k), rd(p["wk"])) + p["bk"]
        vp = jnp.einsum("lbe,ef->lbf", rd(v), rd(p["wv"])) + p["bv"]
        qh = qp.reshape(Lq, B, nhead, d).transpose(1, 2, 0, 3)
        kh = kp.reshape(Lk, B, nhead, d).transpose(1, 2, 0, 3)
        vh = vp.reshape(Lk, B, nhead, d).transpose(1, 2, 0, 3)
        s = jnp.einsum("bhqd,bhkd->bhqk", rd(qh * scale), rd(kh))
        if mask is not None:
            s = s + jnp.where(mask, -1e9, 0.0)[:, None, None, :]
        a = jax.nn.softmax(s, axis=-1)
        o = jnp.einsum("bhqk,bhkd->bhqd", rd(a), rd(vh)).transpose(2, 0, 1, 3).reshape(Lq, B, E)
        return jnp.einsum("lbe,ef->lbf", rd(o), rd(p["wo"])) + p["bo"]

    vis2 = ln(vis, params["norm1_g"], params["norm1_b"])
    qk = vis2 + vis_pos
    vis2 = mha(qk, qk, vis2, params["self_attn"])
    vis = vis + ln(vis2, params["self_attn_norm_g"], params["self_attn_norm_b"])

    vis2 = ln(vis, params["norm2_g"], params["norm2_b"])
    vis2 = mha(vis2 + vis_pos, txt + txt_pos, txt, params["cross_attn"], pad_mask)
    vis = vis + ln(vis2, params["cross_attn_norm_g"], params["cross_attn_norm_b"])

    vis2 = ln(vis, params["norm3_g"], params["norm3_b"])
    fp = params["ffn"]
    h = jnp.maximum(jnp.einsum("lbe,ef->lbf", rd(vis2), rd(fp["w1"])) + fp["b1"], 0.0)
    h = ln(h, fp["ln_g"], fp["ln_b"])
    vis2 = jnp.einsum("lbf,fe->lbe", rd(h), rd(fp["w2"])) + fp["b2"]
    return vis + vis2


if __name__ == "__main__":
    # Small, module-consistent shapes: vis = 4*4 patches, batch=2, d_model=32.
    HW, B, L, E, F_FF, NHEAD = 16, 2, 8, 32, 64, 4

    key = jax.random.PRNGKey(0)
    k_vis, k_txt, k_vp, k_tp, k_par = jax.random.split(key, 5)

    vis = jax.random.normal(k_vis, (HW, B, E), jnp.float32)
    txt = jax.random.normal(k_txt, (L, B, E), jnp.float32)
    vis_pos = jax.random.normal(k_vp, (HW, 1, E), jnp.float32)
    txt_pos = jax.random.normal(k_tp, (L, 1, E), jnp.float32)
    # key_padding_mask: True = ignore. Batch 0 keeps all 8 tokens, batch 1 keeps 5.
    lens = jnp.array([8, 5], jnp.int32)
    pad_mask = jnp.arange(L)[None, :] >= lens[:, None]          # (B, L) bool

    params = init_params(k_par, E, F_FF)

    layer = jax.jit(functools.partial(transformer_decoder_layer, nhead=NHEAD))
    out = jax.block_until_ready(layer(vis, txt, vis_pos, txt_pos, pad_mask, params))
    assert out.shape == (HW, B, E)
    assert bool(jnp.all(jnp.isfinite(out)))

    # Tight check against a reference that applies the same bf16-operand /
    # f32-accumulate matmul policy as the kernel's MXU path.
    ref_mx = _reference_layer(vis, txt, vis_pos, txt_pos, pad_mask, params,
                              NHEAD, mxu_round=True)
    err_mx = float(jnp.max(jnp.abs(out - ref_mx)))
    assert err_mx < 2e-2, f"mismatch vs mixed-precision reference: max|err|={err_mx}"

    # Loose sanity check against the pure-f32 reference (bf16 MXU rounding only).
    ref_f32 = _reference_layer(vis, txt, vis_pos, txt_pos, pad_mask, params,
                               NHEAD, mxu_round=False)
    err_f32 = float(jnp.max(jnp.abs(out - ref_f32)))
    assert err_f32 < 2e-1, f"mismatch vs f32 reference: max|err|={err_f32}"

    print("KERNEL_OK")
</pallas_src>

<mosaic_0001>
module attributes {stable_mosaic.version = 11 : i64} {
  func.func @_decoder_layer_kernel(%arg0: i32, %arg1: i32, %arg2: memref<1x16x32xf32, #tpu.memory_space<vmem>>, %arg3: memref<16x32xf32, #tpu.memory_space<vmem>>, %arg4: memref<1x8x32xf32, #tpu.memory_space<vmem>>, %arg5: memref<8x32xf32, #tpu.memory_space<vmem>>, %arg6: memref<1x1x8xf32, #tpu.memory_space<vmem>>, %arg7: memref<5x1x32xf32, #tpu.memory_space<vmem>>, %arg8: memref<5x1x32xf32, #tpu.memory_space<vmem>>, %arg9: memref<3x32x32xbf16, #tpu.memory_space<vmem>>, %arg10: memref<3x1x32xf32, #tpu.memory_space<vmem>>, %arg11: memref<32x32xbf16, #tpu.memory_space<vmem>>, %arg12: memref<1x32xf32, #tpu.memory_space<vmem>>, %arg13: memref<3x32x32xbf16, #tpu.memory_space<vmem>>, %arg14: memref<3x1x32xf32, #tpu.memory_space<vmem>>, %arg15: memref<32x32xbf16, #tpu.memory_space<vmem>>, %arg16: memref<1x32xf32, #tpu.memory_space<vmem>>, %arg17: memref<32x64xbf16, #tpu.memory_space<vmem>>, %arg18: memref<1x64xf32, #tpu.memory_space<vmem>>, %arg19: memref<1x64xf32, #tpu.memory_space<vmem>>, %arg20: memref<1x64xf32, #tpu.memory_space<vmem>>, %arg21: memref<64x32xbf16, #tpu.memory_space<vmem>>, %arg22: memref<1x32xf32, #tpu.memory_space<vmem>>, %arg23: memref<1x8x32xf32, #tpu.memory_space<vmem>>, %arg24: memref<8x32xf32, #tpu.memory_space<vmem>>) attributes {dimension_semantics = [#tpu.dimension_semantics<parallel>, #tpu.dimension_semantics<parallel>], iteration_bounds = array<i64: 2, 2>, scalar_prefetch = 0 : i64, scratch_operands = 1 : i64, tpu.core_type = #tpu.core_type<tc>, window_params = [{transform_indices = @transform_0, window_bounds = array<i64: 1, 16, 32>}, {pipeline_mode = #tpu.pipeline_mode<synchronous>, transform_indices = @transform_1, window_bounds = array<i64: 16, 32>}, {transform_indices = @transform_2, window_bounds = array<i64: 1, 8, 32>}, {pipeline_mode = #tpu.pipeline_mode<synchronous>, transform_indices = @transform_3, window_bounds = array<i64: 8, 32>}, {transform_indices = @transform_4, window_bounds = array<i64: 1, 1, 8>}, {pipeline_mode = #tpu.pipeline_mode<synchronous>, transform_indices = @transform_5, window_bounds = array<i64: 5, 1, 32>}, {pipeline_mode = #tpu.pipeline_mode<synchronous>, transform_indices = @transform_6, window_bounds = array<i64: 5, 1, 32>}, {pipeline_mode = #tpu.pipeline_mode<synchronous>, transform_indices = @transform_7, window_bounds = array<i64: 3, 32, 32>}, {pipeline_mode = #tpu.pipeline_mode<synchronous>, transform_indices = @transform_8, window_bounds = array<i64: 3, 1, 32>}, {pipeline_mode = #tpu.pipeline_mode<synchronous>, transform_indices = @transform_9, window_bounds = array<i64: 32, 32>}, {pipeline_mode = #tpu.pipeline_mode<synchronous>, transform_indices = @transform_10, window_bounds = array<i64: 1, 32>}, {pipeline_mode = #tpu.pipeline_mode<synchronous>, transform_indices = @transform_11, window_bounds = array<i64: 3, 32, 32>}, {pipeline_mode = #tpu.pipeline_mode<synchronous>, transform_indices = @transform_12, window_bounds = array<i64: 3, 1, 32>}, {pipeline_mode = #tpu.pipeline_mode<synchronous>, transform_indices = @transform_13, window_bounds = array<i64: 32, 32>}, {pipeline_mode = #tpu.pipeline_mode<synchronous>, transform_indices = @transform_14, window_bounds = array<i64: 1, 32>}, {pipeline_mode = #tpu.pipeline_mode<synchronous>, transform_indices = @transform_15, window_bounds = array<i64: 32, 64>}, {pipeline_mode = #tpu.pipeline_mode<synchronous>, transform_indices = @transform_16, window_bounds = array<i64: 1, 64>}, {pipeline_mode = #tpu.pipeline_mode<synchronous>, transform_indices = @transform_17, window_bounds = array<i64: 1, 64>}, {pipeline_mode = #tpu.pipeline_mode<synchronous>, transform_indices = @transform_18, window_bounds = array<i64: 1, 64>}, {pipeline_mode = #tpu.pipeline_mode<synchronous>, transform_indices = @transform_19, window_bounds = array<i64: 64, 32>}, {pipeline_mode = #tpu.pipeline_mode<synchronous>, transform_indices = @transform_20, window_bounds = array<i64: 1, 32>}, {transform_indices = @transform_21, window_bounds = array<i64: 1, 8, 32>}]} {
    %c8_i32 = arith.constant 8 : i32
    %0 = arith.muli %arg1, %c8_i32 : i32
    %1 = tpu.assume_multiple %0, 8 : i32
    %c0 = arith.constant 0 : index
    %2 = arith.index_cast %1 : i32 to index
    %c0_0 = arith.constant 0 : index
    %3 = vector.load %arg2[%c0, %2, %c0_0] : memref<1x16x32xf32, #tpu.memory_space<vmem>>, vector<1x8x32xf32>
    %4 = vector.shape_cast %3 : vector<1x8x32xf32> to vector<8x32xf32>
    %c0_1 = arith.constant 0 : index
    %c0_2 = arith.constant 0 : index
    %c0_3 = arith.constant 0 : index
    %5 = vector.load %arg2[%c0_1, %c0_2, %c0_3] : memref<1x16x32xf32, #tpu.memory_space<vmem>>, vector<1x16x32xf32>
    %6 = vector.shape_cast %5 : vector<1x16x32xf32> to vector<16x32xf32>
    %7 = arith.index_cast %1 : i32 to index
    %c0_4 = arith.constant 0 : index
    %8 = vector.load %arg3[%7, %c0_4] : memref<16x32xf32, #tpu.memory_space<vmem>>, vector<8x32xf32>
    %c0_5 = arith.constant 0 : index
    %c0_6 = arith.constant 0 : index
    %9 = vector.load %arg3[%c0_5, %c0_6] : memref<16x32xf32, #tpu.memory_space<vmem>>, vector<16x32xf32>
    %c0_7 = arith.constant 0 : index
    %c0_8 = arith.constant 0 : index
    %c0_9 = arith.constant 0 : index
    %10 = vector.load %arg4[%c0_7, %c0_8, %c0_9] : memref<1x8x32xf32, #tpu.memory_space<vmem>>, vector<1x8x32xf32>
    %11 = vector.shape_cast %10 : vector<1x8x32xf32> to vector<8x32xf32>
    %c0_10 = arith.constant 0 : index
    %c0_11 = arith.constant 0 : index
    %12 = vector.load %arg5[%c0_10, %c0_11] : memref<8x32xf32, #tpu.memory_space<vmem>>, vector<8x32xf32>
    %c0_12 = arith.constant 0 : index
    %c0_13 = arith.constant 0 : index
    %c0_14 = arith.constant 0 : index
    %13 = vector.load %arg7[%c0_12, %c0_13, %c0_14] : memref<5x1x32xf32, #tpu.memory_space<vmem>>, vector<1x1x32xf32>
    %14 = vector.shape_cast %13 : vector<1x1x32xf32> to vector<1x32xf32>
    %c0_15 = arith.constant 0 : index
    %c0_16 = arith.constant 0 : index
    %c0_17 = arith.constant 0 : index
    %15 = vector.load %arg8[%c0_15, %c0_16, %c0_17] : memref<5x1x32xf32, #tpu.memory_space<vmem>>, vector<1x1x32xf32>
    %16 = vector.shape_cast %15 : vector<1x1x32xf32> to vector<1x32xf32>
    %cst = arith.constant dense<0.000000e+00> : vector<16xf32>
    %17 = vector.multi_reduction <add>, %6, %cst [1] : vector<16x32xf32> to vector<16xf32>
    %18 = vector.shape_cast %17 : vector<16xf32> to vector<16x1xf32>
    %cst_18 = arith.constant 3.200000e+01 : f32
    %19 = vector.broadcast %cst_18 : f32 to vector<16x1xf32>
    %20 = arith.divf %18, %19 : vector<16x1xf32>
    %21 = vector.broadcast %20 : vector<16x1xf32> to vector<16x32xf32>
    %22 = arith.subf %6, %21 : vector<16x32xf32>
    %23 = arith.mulf %22, %22 : vector<16x32xf32>
    %cst_19 = arith.constant dense<0.000000e+00> : vector<16xf32>
    %24 = vector.multi_reduction <add>, %23, %cst_19 [1] : vector<16x32xf32> to vector<16xf32>
    %25 = vector.shape_cast %24 : vector<16xf32> to vector<16x1xf32>
    %cst_20 = arith.constant 3.200000e+01 : f32
    %26 = vector.broadcast %cst_20 : f32 to vector<16x1xf32>
    %27 = arith.divf %25, %26 : vector<16x1xf32>
    %cst_21 = arith.constant 9.99999974E-6 : f32
    %28 = vector.broadcast %cst_21 : f32 to vector<16x1xf32>
    %29 = arith.addf %27, %28 : vector<16x1xf32>
    %30 = math.rsqrt %29 : vector<16x1xf32>
    %31 = vector.broadcast %30 : vector<16x1xf32> to vector<16x32xf32>
    %32 = arith.mulf %22, %31 : vector<16x32xf32>
    %33 = vector.broadcast %14 : vector<1x32xf32> to vector<16x32xf32>
    %34 = arith.mulf %32, %33 : vector<16x32xf32>
    %35 = vector.broadcast %16 : vector<1x32xf32> to vector<16x32xf32>
    %36 = arith.addf %34, %35 : vector<16x32xf32>
    %c0_22 = arith.constant 0 : index
    %c0_23 = arith.constant 0 : index
    %c0_24 = arith.constant 0 : index
    %37 = vector.load %arg7[%c0_22, %c0_23, %c0_24] : memref<5x1x32xf32, #tpu.memory_space<vmem>>, vector<1x1x32xf32>
    %38 = vector.shape_cast %37 : vector<1x1x32xf32> to vector<1x32xf32>
    %c0_25 = arith.constant 0 : index
    %c0_26 = arith.constant 0 : index
    %c0_27 = arith.constant 0 : index
    %39 = vector.load %arg8[%c0_25, %c0_26, %c0_27] : memref<5x1x32xf32, #tpu.memory_space<vmem>>, vector<1x1x32xf32>
    %40 = vector.shape_cast %39 : vector<1x1x32xf32> to vector<1x32xf32>
    %cst_28 = arith.constant dense<0.000000e+00> : vector<8xf32>
    %41 = vector.multi_reduction <add>, %4, %cst_28 [1] : vector<8x32xf32> to vector<8xf32>
    %42 = vector.shape_cast %41 : vector<8xf32> to vector<8x1xf32>
    %cst_29 = arith.constant 3.200000e+01 : f32
    %43 = vector.broadcast %cst_29 : f32 to vector<8x1xf32>
    %44 = arith.divf %42, %43 : vector<8x1xf32>
    %45 = vector.broadcast %44 : vector<8x1xf32> to vector<8x32xf32>
    %46 = arith.subf %4, %45 : vector<8x32xf32>
    %47 = arith.mulf %46, %46 : vector<8x32xf32>
    %cst_30 = arith.constant dense<0.000000e+00> : vector<8xf32>
    %48 = vector.multi_reduction <add>, %47, %cst_30 [1] : vector<8x32xf32> to vector<8xf32>
    %49 = vector.shape_cast %48 : vector<8xf32> to vector<8x1xf32>
    %cst_31 = arith.constant 3.200000e+01 : f32
    %50 = vector.broadcast %cst_31 : f32 to vector<8x1xf32>
    %51 = arith.divf %49, %50 : vector<8x1xf32>
    %cst_32 = arith.constant 9.99999974E-6 : f32
    %52 = vector.broadcast %cst_32 : f32 to vector<8x1xf32>
    %53 = arith.addf %51, %52 : vector<8x1xf32>
    %54 = math.rsqrt %53 : vector<8x1xf32>
    %55 = vector.broadcast %54 : vector<8x1xf32> to vector<8x32xf32>
    %56 = arith.mulf %46, %55 : vector<8x32xf32>
    %57 = vector.broadcast %38 : vector<1x32xf32> to vector<8x32xf32>
    %58 = arith.mulf %56, %57 : vector<8x32xf32>
    %59 = vector.broadcast %40 : vector<1x32xf32> to vector<8x32xf32>
    %60 = arith.addf %58, %59 : vector<8x32xf32>
    %61 = arith.addf %60, %8 : vector<8x32xf32>
    %62 = arith.addf %36, %9 : vector<16x32xf32>
    %63 = arith.truncf %61 : vector<8x32xf32> to vector<8x32xbf16>
    %c0_33 = arith.constant 0 : index
    %c0_34 = arith.constant 0 : index
    %c0_35 = arith.constant 0 : index
    %64 = vector.load %arg9[%c0_33, %c0_34, %c0_35] : memref<3x32x32xbf16, #tpu.memory_space<vmem>>, vector<1x32x32xbf16>
    %65 = vector.shape_cast %64 : vector<1x32x32xbf16> to vector<32x32xbf16>
    %cst_36 = arith.constant dense<0.000000e+00> : vector<8x32xf32>
    %66 = tpu.matmul %63, %65, %cst_36 {dimension_numbers = #tpu.dot_dimension_numbers<[1], [0], [0], [1], [0, 0, 1, 1], [], []>} : vector<8x32xbf16>, vector<32x32xbf16>, vector<8x32xf32> -> vector<8x32xf32>
    %c0_37 = arith.constant 0 : index
    %c0_38 = arith.constant 0 : index
    %c0_39 = arith.constant 0 : index
    %67 = vector.load %arg10[%c0_37, %c0_38, %c0_39] : memref<3x1x32xf32, #tpu.memory_space<vmem>>, vector<1x1x32xf32>
    %68 = vector.shape_cast %67 : vector<1x1x32xf32> to vector<1x32xf32>
    %69 = vector.broadcast %68 : vector<1x32xf32> to vector<8x32xf32>
    %70 = arith.addf %66, %69 : vector<8x32xf32>
    %71 = arith.truncf %62 : vector<16x32xf32> to vector<16x32xbf16>
    %c1 = arith.constant 1 : index
    %c0_40 = arith.constant 0 : index
    %c0_41 = arith.constant 0 : index
    %72 = vector.load %arg9[%c1, %c0_40, %c0_41] : memref<3x32x32xbf16, #tpu.memory_space<vmem>>, vector<1x32x32xbf16>
    %73 = vector.shape_cast %72 : vector<1x32x32xbf16> to vector<32x32xbf16>
    %cst_42 = arith.constant dense<0.000000e+00> : vector<16x32xf32>
    %74 = tpu.matmul %71, %73, %cst_42 {dimension_numbers = #tpu.dot_dimension_numbers<[1], [0], [0], [1], [0, 0, 1, 1], [], []>} : vector<16x32xbf16>, vector<32x32xbf16>, vector<16x32xf32> -> vector<16x32xf32>
    %c1_43 = arith.constant 1 : index
    %c0_44 = arith.constant 0 : index
    %c0_45 = arith.constant 0 : index
    %75 = vector.load %arg10[%c1_43, %c0_44, %c0_45] : memref<3x1x32xf32, #tpu.memory_space<vmem>>, vector<1x1x32xf32>
    %76 = vector.shape_cast %75 : vector<1x1x32xf32> to vector<1x32xf32>
    %77 = vector.broadcast %76 : vector<1x32xf32> to vector<16x32xf32>
    %78 = arith.addf %74, %77 : vector<16x32xf32>
    %79 = arith.truncf %36 : vector<16x32xf32> to vector<16x32xbf16>
    %c2 = arith.constant 2 : index
    %c0_46 = arith.constant 0 : index
    %c0_47 = arith.constant 0 : index
    %80 = vector.load %arg9[%c2, %c0_46, %c0_47] : memref<3x32x32xbf16, #tpu.memory_space<vmem>>, vector<1x32x32xbf16>
    %81 = vector.shape_cast %80 : vector<1x32x32xbf16> to vector<32x32xbf16>
    %cst_48 = arith.constant dense<0.000000e+00> : vector<16x32xf32>
    %82 = tpu.matmul %79, %81, %cst_48 {dimension_numbers = #tpu.dot_dimension_numbers<[1], [0], [0], [1], [0, 0, 1, 1], [], []>} : vector<16x32xbf16>, vector<32x32xbf16>, vector<16x32xf32> -> vector<16x32xf32>
    %c2_49 = arith.constant 2 : index
    %c0_50 = arith.constant 0 : index
    %c0_51 = arith.constant 0 : index
    %83 = vector.load %arg10[%c2_49, %c0_50, %c0_51] : memref<3x1x32xf32, #tpu.memory_space<vmem>>, vector<1x1x32xf32>
    %84 = vector.shape_cast %83 : vector<1x1x32xf32> to vector<1x32xf32>
    %85 = vector.broadcast %84 : vector<1x32xf32> to vector<16x32xf32>
    %86 = arith.addf %82, %85 : vector<16x32xf32>
    %87 = vector.extract_strided_slice %70 {offsets = [0, 0], sizes = [8, 8], strides = [1, 1]} : vector<8x32xf32> to vector<8x8xf32>
    %cst_52 = arith.constant 0.353553385 : f32
    %88 = vector.broadcast %cst_52 : f32 to vector<8x8xf32>
    %89 = arith.mulf %87, %88 : vector<8x8xf32>
    %90 = arith.truncf %89 : vector<8x8xf32> to vector<8x8xbf16>
    %91 = vector.extract_strided_slice %78 {offsets = [0, 0], sizes = [16, 8], strides = [1, 1]} : vector<16x32xf32> to vector<16x8xf32>
    %92 = arith.truncf %91 : vector<16x8xf32> to vector<16x8xbf16>
    %93 = vector.extract_strided_slice %86 {offsets = [0, 0], sizes = [16, 8], strides = [1, 1]} : vector<16x32xf32> to vector<16x8xf32>
    %94 = arith.truncf %93 : vector<16x8xf32> to vector<16x8xbf16>
    %cst_53 = arith.constant dense<0.000000e+00> : vector<8x16xf32>
    %95 = tpu.matmul %90, %92, %cst_53 {dimension_numbers = #tpu.dot_dimension_numbers<[1], [1], [0], [0], [0, 0, 1, 0], [], []>} : vector<8x8xbf16>, vector<16x8xbf16>, vector<8x16xf32> -> vector<8x16xf32>
    %cst_54 = arith.constant dense<0xFF800000> : vector<8xf32>
    %96 = vector.multi_reduction <maximumf>, %95, %cst_54 [1] : vector<8x16xf32> to vector<8xf32>
    %97 = vector.shape_cast %96 : vector<8xf32> to vector<8x1xf32>
    %98 = vector.broadcast %97 : vector<8x1xf32> to vector<8x16xf32>
    %99 = arith.subf %95, %98 : vector<8x16xf32>
    %100 = math.exp %99 : vector<8x16xf32>
    %cst_55 = arith.constant dense<0.000000e+00> : vector<8xf32>
    %101 = vector.multi_reduction <add>, %100, %cst_55 [1] : vector<8x16xf32> to vector<8xf32>
    %102 = vector.shape_cast %101 : vector<8xf32> to vector<8x1xf32>
    %103 = tpu.reciprocal %102 {approx = true} : vector<8x1xf32> -> vector<8x1xf32>
    %104 = vector.broadcast %103 : vector<8x1xf32> to vector<8x16xf32>
    %105 = arith.mulf %100, %104 : vector<8x16xf32>
    %106 = arith.truncf %105 : vector<8x16xf32> to vector<8x16xbf16>
    %cst_56 = arith.constant dense<0.000000e+00> : vector<8x8xf32>
    %107 = tpu.matmul %106, %94, %cst_56 {dimension_numbers = #tpu.dot_dimension_numbers<[1], [0], [0], [1], [0, 0, 1, 1], [], []>} : vector<8x16xbf16>, vector<16x8xbf16>, vector<8x8xf32> -> vector<8x8xf32>
    %c0_57 = arith.constant 0 : index
    %c0_58 = arith.constant 0 : index
    %108 = vector.load %arg24[%c0_57, %c0_58] : memref<8x32xf32, #tpu.memory_space<vmem>>, vector<8x8xf32>
    tpu.vector_store %arg24[%c0_57, %c0_58], %107 {strides = array<i32>} : memref<8x32xf32, #tpu.memory_space<vmem>>, vector<8x8xf32>,
    %109 = vector.extract_strided_slice %70 {offsets = [0, 8], sizes = [8, 8], strides = [1, 1]} : vector<8x32xf32> to vector<8x8xf32>
    %cst_59 = arith.constant 0.353553385 : f32
    %110 = vector.broadcast %cst_59 : f32 to vector<8x8xf32>
    %111 = arith.mulf %109, %110 : vector<8x8xf32>
    %112 = arith.truncf %111 : vector<8x8xf32> to vector<8x8xbf16>
    %113 = vector.extract_strided_slice %78 {offsets = [0, 8], sizes = [16, 8], strides = [1, 1]} : vector<16x32xf32> to vector<16x8xf32>
    %114 = arith.truncf %113 : vector<16x8xf32> to vector<16x8xbf16>
    %115 = vector.extract_strided_slice %86 {offsets = [0, 8], sizes = [16, 8], strides = [1, 1]} : vector<16x32xf32> to vector<16x8xf32>
    %116 = arith.truncf %115 : vector<16x8xf32> to vector<16x8xbf16>
    %cst_60 = arith.constant dense<0.000000e+00> : vector<8x16xf32>
    %117 = tpu.matmul %112, %114, %cst_60 {dimension_numbers = #tpu.dot_dimension_numbers<[1], [1], [0], [0], [0, 0, 1, 0], [], []>} : vector<8x8xbf16>, vector<16x8xbf16>, vector<8x16xf32> -> vector<8x16xf32>
    %cst_61 = arith.constant dense<0xFF800000> : vector<8xf32>
    %118 = vector.multi_reduction <maximumf>, %117, %cst_61 [1] : vector<8x16xf32> to vector<8xf32>
    %119 = vector.shape_cast %118 : vector<8xf32> to vector<8x1xf32>
    %120 = vector.broadcast %119 : vector<8x1xf32> to vector<8x16xf32>
    %121 = arith.subf %117, %120 : vector<8x16xf32>
    %122 = math.exp %121 : vector<8x16xf32>
    %cst_62 = arith.constant dense<0.000000e+00> : vector<8xf32>
    %123 = vector.multi_reduction <add>, %122, %cst_62 [1] : vector<8x16xf32> to vector<8xf32>
    %124 = vector.shape_cast %123 : vector<8xf32> to vector<8x1xf32>
    %125 = tpu.reciprocal %124 {approx = true} : vector<8x1xf32> -> vector<8x1xf32>
    %126 = vector.broadcast %125 : vector<8x1xf32> to vector<8x16xf32>
    %127 = arith.mulf %122, %126 : vector<8x16xf32>
    %128 = arith.truncf %127 : vector<8x16xf32> to vector<8x16xbf16>
    %cst_63 = arith.constant dense<0.000000e+00> : vector<8x8xf32>
    %129 = tpu.matmul %128, %116, %cst_63 {dimension_numbers = #tpu.dot_dimension_numbers<[1], [0], [0], [1], [0, 0, 1, 1], [], []>} : vector<8x16xbf16>, vector<16x8xbf16>, vector<8x8xf32> -> vector<8x8xf32>
    %c0_64 = arith.constant 0 : index
    %c8 = arith.constant 8 : index
    %130 = vector.load %arg24[%c0_64, %c8] : memref<8x32xf32, #tpu.memory_space<vmem>>, vector<8x8xf32>
    tpu.vector_store %arg24[%c0_64, %c8], %129 {strides = array<i32>} : memref<8x32xf32, #tpu.memory_space<vmem>>, vector<8x8xf32>,
    %131 = vector.extract_strided_slice %70 {offsets = [0, 16], sizes = [8, 8], strides = [1, 1]} : vector<8x32xf32> to vector<8x8xf32>
    %cst_65 = arith.constant 0.353553385 : f32
    %132 = vector.broadcast %cst_65 : f32 to vector<8x8xf32>
    %133 = arith.mulf %131, %132 : vector<8x8xf32>
    %134 = arith.truncf %133 : vector<8x8xf32> to vector<8x8xbf16>
    %135 = vector.extract_strided_slice %78 {offsets = [0, 16], sizes = [16, 8], strides = [1, 1]} : vector<16x32xf32> to vector<16x8xf32>
    %136 = arith.truncf %135 : vector<16x8xf32> to vector<16x8xbf16>
    %137 = vector.extract_strided_slice %86 {offsets = [0, 16], sizes = [16, 8], strides = [1, 1]} : vector<16x32xf32> to vector<16x8xf32>
    %138 = arith.truncf %137 : vector<16x8xf32> to vector<16x8xbf16>
    %cst_66 = arith.constant dense<0.000000e+00> : vector<8x16xf32>
    %139 = tpu.matmul %134, %136, %cst_66 {dimension_numbers = #tpu.dot_dimension_numbers<[1], [1], [0], [0], [0, 0, 1, 0], [], []>} : vector<8x8xbf16>, vector<16x8xbf16>, vector<8x16xf32> -> vector<8x16xf32>
    %cst_67 = arith.constant dense<0xFF800000> : vector<8xf32>
    %140 = vector.multi_reduction <maximumf>, %139, %cst_67 [1] : vector<8x16xf32> to vector<8xf32>
    %141 = vector.shape_cast %140 : vector<8xf32> to vector<8x1xf32>
    %142 = vector.broadcast %141 : vector<8x1xf32> to vector<8x16xf32>
    %143 = arith.subf %139, %142 : vector<8x16xf32>
    %144 = math.exp %143 : vector<8x16xf32>
    %cst_68 = arith.constant dense<0.000000e+00> : vector<8xf32>
    %145 = vector.multi_reduction <add>, %144, %cst_68 [1] : vector<8x16xf32> to vector<8xf32>
    %146 = vector.shape_cast %145 : vector<8xf32> to vector<8x1xf32>
    %147 = tpu.reciprocal %146 {approx = true} : vector<8x1xf32> -> vector<8x1xf32>
    %148 = vector.broadcast %147 : vector<8x1xf32> to vector<8x16xf32>
    %149 = arith.mulf %144, %148 : vector<8x16xf32>
    %150 = arith.truncf %149 : vector<8x16xf32> to vector<8x16xbf16>
    %cst_69 = arith.constant dense<0.000000e+00> : vector<8x8xf32>
    %151 = tpu.matmul %150, %138, %cst_69 {dimension_numbers = #tpu.dot_dimension_numbers<[1], [0], [0], [1], [0, 0, 1, 1], [], []>} : vector<8x16xbf16>, vector<16x8xbf16>, vector<8x8xf32> -> vector<8x8xf32>
    %c0_70 = arith.constant 0 : index
    %c16 = arith.constant 16 : index
    %152 = vector.load %arg24[%c0_70, %c16] : memref<8x32xf32, #tpu.memory_space<vmem>>, vector<8x8xf32>
    tpu.vector_store %arg24[%c0_70, %c16], %151 {strides = array<i32>} : memref<8x32xf32, #tpu.memory_space<vmem>>, vector<8x8xf32>,
    %153 = vector.extract_strided_slice %70 {offsets = [0, 24], sizes = [8, 8], strides = [1, 1]} : vector<8x32xf32> to vector<8x8xf32>
    %cst_71 = arith.constant 0.353553385 : f32
    %154 = vector.broadcast %cst_71 : f32 to vector<8x8xf32>
    %155 = arith.mulf %153, %154 : vector<8x8xf32>
    %156 = arith.truncf %155 : vector<8x8xf32> to vector<8x8xbf16>
    %157 = vector.extract_strided_slice %78 {offsets = [0, 24], sizes = [16, 8], strides = [1, 1]} : vector<16x32xf32> to vector<16x8xf32>
    %158 = arith.truncf %157 : vector<16x8xf32> to vector<16x8xbf16>
    %159 = vector.extract_strided_slice %86 {offsets = [0, 24], sizes = [16, 8], strides = [1, 1]} : vector<16x32xf32> to vector<16x8xf32>
    %160 = arith.truncf %159 : vector<16x8xf32> to vector<16x8xbf16>
    %cst_72 = arith.constant dense<0.000000e+00> : vector<8x16xf32>
    %161 = tpu.matmul %156, %158, %cst_72 {dimension_numbers = #tpu.dot_dimension_numbers<[1], [1], [0], [0], [0, 0, 1, 0], [], []>} : vector<8x8xbf16>, vector<16x8xbf16>, vector<8x16xf32> -> vector<8x16xf32>
    %cst_73 = arith.constant dense<0xFF800000> : vector<8xf32>
    %162 = vector.multi_reduction <maximumf>, %161, %cst_73 [1] : vector<8x16xf32> to vector<8xf32>
    %163 = vector.shape_cast %162 : vector<8xf32> to vector<8x1xf32>
    %164 = vector.broadcast %163 : vector<8x1xf32> to vector<8x16xf32>
    %165 = arith.subf %161, %164 : vector<8x16xf32>
    %166 = math.exp %165 : vector<8x16xf32>
    %cst_74 = arith.constant dense<0.000000e+00> : vector<8xf32>
    %167 = vector.multi_reduction <add>, %166, %cst_74 [1] : vector<8x16xf32> to vector<8xf32>
    %168 = vector.shape_cast %167 : vector<8xf32> to vector<8x1xf32>
    %169 = tpu.reciprocal %168 {approx = true} : vector<8x1xf32> -> vector<8x1xf32>
    %170 = vector.broadcast %169 : vector<8x1xf32> to vector<8x16xf32>
    %171 = arith.mulf %166, %170 : vector<8x16xf32>
    %172 = arith.truncf %171 : vector<8x16xf32> to vector<8x16xbf16>
    %cst_75 = arith.constant dense<0.000000e+00> : vector<8x8xf32>
    %173 = tpu.matmul %172, %160, %cst_75 {dimension_numbers = #tpu.dot_dimension_numbers<[1], [0], [0], [1], [0, 0, 1, 1], [], []>} : vector<8x16xbf16>, vector<16x8xbf16>, vector<8x8xf32> -> vector<8x8xf32>
    %c0_76 = arith.constant 0 : index
    %c24 = arith.constant 24 : index
    %174 = vector.load %arg24[%c0_76, %c24] : memref<8x32xf32, #tpu.memory_space<vmem>>, vector<8x8xf32>
    tpu.vector_store %arg24[%c0_76, %c24], %173 {strides = array<i32>} : memref<8x32xf32, #tpu.memory_space<vmem>>, vector<8x8xf32>,
    %c0_77 = arith.constant 0 : index
    %c0_78 = arith.constant 0 : index
    %175 = vector.load %arg24[%c0_77, %c0_78] : memref<8x32xf32, #tpu.memory_space<vmem>>, vector<8x32xf32>
    %176 = arith.truncf %175 : vector<8x32xf32> to vector<8x32xbf16>
    %c0_79 = arith.constant 0 : index
    %c0_80 = arith.constant 0 : index
    %177 = vector.load %arg11[%c0_79, %c0_80] : memref<32x32xbf16, #tpu.memory_space<vmem>>, vector<32x32xbf16>
    %cst_81 = arith.constant dense<0.000000e+00> : vector<8x32xf32>
    %178 = tpu.matmul %176, %177, %cst_81 {dimension_numbers = #tpu.dot_dimension_numbers<[1], [0], [0], [1], [0, 0, 1, 1], [], []>} : vector<8x32xbf16>, vector<32x32xbf16>, vector<8x32xf32> -> vector<8x32xf32>
    %c0_82 = arith.constant 0 : index
    %c0_83 = arith.constant 0 : index
    %179 = vector.load %arg12[%c0_82, %c0_83] : memref<1x32xf32, #tpu.memory_space<vmem>>, vector<1x32xf32>
    %180 = vector.broadcast %179 : vector<1x32xf32> to vector<8x32xf32>
    %181 = arith.addf %178, %180 : vector<8x32xf32>
    %c3 = arith.constant 3 : index
    %c0_84 = arith.constant 0 : index
    %c0_85 = arith.constant 0 : index
    %182 = vector.load %arg7[%c3, %c0_84, %c0_85] : memref<5x1x32xf32, #tpu.memory_space<vmem>>, vector<1x1x32xf32>
    %183 = vector.shape_cast %182 : vector<1x1x32xf32> to vector<1x32xf32>
    %c3_86 = arith.constant 3 : index
    %c0_87 = arith.constant 0 : index
    %c0_88 = arith.constant 0 : index
    %184 = vector.load %arg8[%c3_86, %c0_87, %c0_88] : memref<5x1x32xf32, #tpu.memory_space<vmem>>, vector<1x1x32xf32>
    %185 = vector.shape_cast %184 : vector<1x1x32xf32> to vector<1x32xf32>
    %cst_89 = arith.constant dense<0.000000e+00> : vector<8xf32>
    %186 = vector.multi_reduction <add>, %181, %cst_89 [1] : vector<8x32xf32> to vector<8xf32>
    %187 = vector.shape_cast %186 : vector<8xf32> to vector<8x1xf32>
    %cst_90 = arith.constant 3.200000e+01 : f32
    %188 = vector.broadcast %cst_90 : f32 to vector<8x1xf32>
    %189 = arith.divf %187, %188 : vector<8x1xf32>
    %190 = vector.broadcast %189 : vector<8x1xf32> to vector<8x32xf32>
    %191 = arith.subf %181, %190 : vector<8x32xf32>
    %192 = arith.mulf %191, %191 : vector<8x32xf32>
    %cst_91 = arith.constant dense<0.000000e+00> : vector<8xf32>
    %193 = vector.multi_reduction <add>, %192, %cst_91 [1] : vector<8x32xf32> to vector<8xf32>
    %194 = vector.shape_cast %193 : vector<8xf32> to vector<8x1xf32>
    %cst_92 = arith.constant 3.200000e+01 : f32
    %195 = vector.broadcast %cst_92 : f32 to vector<8x1xf32>
    %196 = arith.divf %194, %195 : vector<8x1xf32>
    %cst_93 = arith.constant 9.99999974E-6 : f32
    %197 = vector.broadcast %cst_93 : f32 to vector<8x1xf32>
    %198 = arith.addf %196, %197 : vector<8x1xf32>
    %199 = math.rsqrt %198 : vector<8x1xf32>
    %200 = vector.broadcast %199 : vector<8x1xf32> to vector<8x32xf32>
    %201 = arith.mulf %191, %200 : vector<8x32xf32>
    %202 = vector.broadcast %183 : vector<1x32xf32> to vector<8x32xf32>
    %203 = arith.mulf %201, %202 : vector<8x32xf32>
    %204 = vector.broadcast %185 : vector<1x32xf32> to vector<8x32xf32>
    %205 = arith.addf %203, %204 : vector<8x32xf32>
    %206 = arith.addf %4, %205 : vector<8x32xf32>
    %c1_94 = arith.constant 1 : index
    %c0_95 = arith.constant 0 : index
    %c0_96 = arith.constant 0 : index
    %207 = vector.load %arg7[%c1_94, %c0_95, %c0_96] : memref<5x1x32xf32, #tpu.memory_space<vmem>>, vector<1x1x32xf32>
    %208 = vector.shape_cast %207 : vector<1x1x32xf32> to vector<1x32xf32>
    %c1_97 = arith.constant 1 : index
    %c0_98 = arith.constant 0 : index
    %c0_99 = arith.constant 0 : index
    %209 = vector.load %arg8[%c1_97, %c0_98, %c0_99] : memref<5x1x32xf32, #tpu.memory_space<vmem>>, vector<1x1x32xf32>
    %210 = vector.shape_cast %209 : vector<1x1x32xf32> to vector<1x32xf32>
    %cst_100 = arith.constant dense<0.000000e+00> : vector<8xf32>
    %211 = vector.multi_reduction <add>, %206, %cst_100 [1] : vector<8x32xf32> to vector<8xf32>
    %212 = vector.shape_cast %211 : vector<8xf32> to vector<8x1xf32>
    %cst_101 = arith.constant 3.200000e+01 : f32
    %213 = vector.broadcast %cst_101 : f32 to vector<8x1xf32>
    %214 = arith.divf %212, %213 : vector<8x1xf32>
    %215 = vector.broadcast %214 : vector<8x1xf32> to vector<8x32xf32>
    %216 = arith.subf %206, %215 : vector<8x32xf32>
    %217 = arith.mulf %216, %216 : vector<8x32xf32>
    %cst_102 = arith.constant dense<0.000000e+00> : vector<8xf32>
    %218 = vector.multi_reduction <add>, %217, %cst_102 [1] : vector<8x32xf32> to vector<8xf32>
    %219 = vector.shape_cast %218 : vector<8xf32> to vector<8x1xf32>
    %cst_103 = arith.constant 3.200000e+01 : f32
    %220 = vector.broadcast %cst_103 : f32 to vector<8x1xf32>
    %221 = arith.divf %219, %220 : vector<8x1xf32>
    %cst_104 = arith.constant 9.99999974E-6 : f32
    %222 = vector.broadcast %cst_104 : f32 to vector<8x1xf32>
    %223 = arith.addf %221, %222 : vector<8x1xf32>
    %224 = math.rsqrt %223 : vector<8x1xf32>
    %225 = vector.broadcast %224 : vector<8x1xf32> to vector<8x32xf32>
    %226 = arith.mulf %216, %225 : vector<8x32xf32>
    %227 = vector.broadcast %208 : vector<1x32xf32> to vector<8x32xf32>
    %228 = arith.mulf %226, %227 : vector<8x32xf32>
    %229 = vector.broadcast %210 : vector<1x32xf32> to vector<8x32xf32>
    %230 = arith.addf %228, %229 : vector<8x32xf32>
    %231 = arith.addf %230, %8 : vector<8x32xf32>
    %232 = arith.addf %11, %12 : vector<8x32xf32>
    %c0_105 = arith.constant 0 : index
    %c0_106 = arith.constant 0 : index
    %c0_107 = arith.constant 0 : index
    %233 = vector.load %arg6[%c0_105, %c0_106, %c0_107] : memref<1x1x8xf32, #tpu.memory_space<vmem>>, vector<1x1x8xf32>
    %234 = vector.shape_cast %233 : vector<1x1x8xf32> to vector<1x8xf32>
    %235 = arith.truncf %231 : vector<8x32xf32> to vector<8x32xbf16>
    %c0_108 = arith.constant 0 : index
    %c0_109 = arith.constant 0 : index
    %c0_110 = arith.constant 0 : index
    %236 = vector.load %arg13[%c0_108, %c0_109, %c0_110] : memref<3x32x32xbf16, #tpu.memory_space<vmem>>, vector<1x32x32xbf16>
    %237 = vector.shape_cast %236 : vector<1x32x32xbf16> to vector<32x32xbf16>
    %cst_111 = arith.constant dense<0.000000e+00> : vector<8x32xf32>
    %238 = tpu.matmul %235, %237, %cst_111 {dimension_numbers = #tpu.dot_dimension_numbers<[1], [0], [0], [1], [0, 0, 1, 1], [], []>} : vector<8x32xbf16>, vector<32x32xbf16>, vector<8x32xf32> -> vector<8x32xf32>
    %c0_112 = arith.constant 0 : index
    %c0_113 = arith.constant 0 : index
    %c0_114 = arith.constant 0 : index
    %239 = vector.load %arg14[%c0_112, %c0_113, %c0_114] : memref<3x1x32xf32, #tpu.memory_space<vmem>>, vector<1x1x32xf32>
    %240 = vector.shape_cast %239 : vector<1x1x32xf32> to vector<1x32xf32>
    %241 = vector.broadcast %240 : vector<1x32xf32> to vector<8x32xf32>
    %242 = arith.addf %238, %241 : vector<8x32xf32>
    %243 = arith.truncf %232 : vector<8x32xf32> to vector<8x32xbf16>
    %c1_115 = arith.constant 1 : index
    %c0_116 = arith.constant 0 : index
    %c0_117 = arith.constant 0 : index
    %244 = vector.load %arg13[%c1_115, %c0_116, %c0_117] : memref<3x32x32xbf16, #tpu.memory_space<vmem>>, vector<1x32x32xbf16>
    %245 = vector.shape_cast %244 : vector<1x32x32xbf16> to vector<32x32xbf16>
    %cst_118 = arith.constant dense<0.000000e+00> : vector<8x32xf32>
    %246 = tpu.matmul %243, %245, %cst_118 {dimension_numbers = #tpu.dot_dimension_numbers<[1], [0], [0], [1], [0, 0, 1, 1], [], []>} : vector<8x32xbf16>, vector<32x32xbf16>, vector<8x32xf32> -> vector<8x32xf32>
    %c1_119 = arith.constant 1 : index
    %c0_120 = arith.constant 0 : index
    %c0_121 = arith.constant 0 : index
    %247 = vector.load %arg14[%c1_119, %c0_120, %c0_121] : memref<3x1x32xf32, #tpu.memory_space<vmem>>, vector<1x1x32xf32>
    %248 = vector.shape_cast %247 : vector<1x1x32xf32> to vector<1x32xf32>
    %249 = vector.broadcast %248 : vector<1x32xf32> to vector<8x32xf32>
    %250 = arith.addf %246, %249 : vector<8x32xf32>
    %251 = arith.truncf %11 : vector<8x32xf32> to vector<8x32xbf16>
    %c2_122 = arith.constant 2 : index
    %c0_123 = arith.constant 0 : index
    %c0_124 = arith.constant 0 : index
    %252 = vector.load %arg13[%c2_122, %c0_123, %c0_124] : memref<3x32x32xbf16, #tpu.memory_space<vmem>>, vector<1x32x32xbf16>
    %253 = vector.shape_cast %252 : vector<1x32x32xbf16> to vector<32x32xbf16>
    %cst_125 = arith.constant dense<0.000000e+00> : vector<8x32xf32>
    %254 = tpu.matmul %251, %253, %cst_125 {dimension_numbers = #tpu.dot_dimension_numbers<[1], [0], [0], [1], [0, 0, 1, 1], [], []>} : vector<8x32xbf16>, vector<32x32xbf16>, vector<8x32xf32> -> vector<8x32xf32>
    %c2_126 = arith.constant 2 : index
    %c0_127 = arith.constant 0 : index
    %c0_128 = arith.constant 0 : index
    %255 = vector.load %arg14[%c2_126, %c0_127, %c0_128] : memref<3x1x32xf32, #tpu.memory_space<vmem>>, vector<1x1x32xf32>
    %256 = vector.shape_cast %255 : vector<1x1x32xf32> to vector<1x32xf32>
    %257 = vector.broadcast %256 : vector<1x32xf32> to vector<8x32xf32>
    %258 = arith.addf %254, %257 : vector<8x32xf32>
    %259 = vector.extract_strided_slice %242 {offsets = [0, 0], sizes = [8, 8], strides = [1, 1]} : vector<8x32xf32> to vector<8x8xf32>
    %cst_129 = arith.constant 0.353553385 : f32
    %260 = vector.broadcast %cst_129 : f32 to vector<8x8xf32>
    %261 = arith.mulf %259, %260 : vector<8x8xf32>
    %262 = arith.truncf %261 : vector<8x8xf32> to vector<8x8xbf16>
    %263 = vector.extract_strided_slice %250 {offsets = [0, 0], sizes = [8, 8], strides = [1, 1]} : vector<8x32xf32> to vector<8x8xf32>
    %264 = arith.truncf %263 : vector<8x8xf32> to vector<8x8xbf16>
    %265 = vector.extract_strided_slice %258 {offsets = [0, 0], sizes = [8, 8], strides = [1, 1]} : vector<8x32xf32> to vector<8x8xf32>
    %266 = arith.truncf %265 : vector<8x8xf32> to vector<8x8xbf16>
    %cst_130 = arith.constant dense<0.000000e+00> : vector<8x8xf32>
    %267 = tpu.matmul %262, %264, %cst_130 {dimension_numbers = #tpu.dot_dimension_numbers<[1], [1], [0], [0], [0, 0, 1, 0], [], []>} : vector<8x8xbf16>, vector<8x8xbf16>, vector<8x8xf32> -> vector<8x8xf32>
    %268 = vector.broadcast %234 : vector<1x8xf32> to vector<8x8xf32>
    %269 = arith.addf %267, %268 : vector<8x8xf32>
    %cst_131 = arith.constant dense<0xFF800000> : vector<8xf32>
    %270 = vector.multi_reduction <maximumf>, %269, %cst_131 [1] : vector<8x8xf32> to vector<8xf32>
    %271 = vector.shape_cast %270 : vector<8xf32> to vector<8x1xf32>
    %272 = vector.broadcast %271 : vector<8x1xf32> to vector<8x8xf32>
    %273 = arith.subf %269, %272 : vector<8x8xf32>
    %274 = math.exp %273 : vector<8x8xf32>
    %cst_132 = arith.constant dense<0.000000e+00> : vector<8xf32>
    %275 = vector.multi_reduction <add>, %274, %cst_132 [1] : vector<8x8xf32> to vector<8xf32>
    %276 = vector.shape_cast %275 : vector<8xf32> to vector<8x1xf32>
    %277 = tpu.reciprocal %276 {approx = true} : vector<8x1xf32> -> vector<8x1xf32>
    %278 = vector.broadcast %277 : vector<8x1xf32> to vector<8x8xf32>
    %279 = arith.mulf %274, %278 : vector<8x8xf32>
    %280 = arith.truncf %279 : vector<8x8xf32> to vector<8x8xbf16>
    %cst_133 = arith.constant dense<0.000000e+00> : vector<8x8xf32>
    %281 = tpu.matmul %280, %266, %cst_133 {dimension_numbers = #tpu.dot_dimension_numbers<[1], [0], [0], [1], [0, 0, 1, 1], [], []>} : vector<8x8xbf16>, vector<8x8xbf16>, vector<8x8xf32> -> vector<8x8xf32>
    %c0_134 = arith.constant 0 : index
    %c0_135 = arith.constant 0 : index
    %282 = vector.load %arg24[%c0_134, %c0_135] : memref<8x32xf32, #tpu.memory_space<vmem>>, vector<8x8xf32>
    tpu.vector_store %arg24[%c0_134, %c0_135], %281 {strides = array<i32>} : memref<8x32xf32, #tpu.memory_space<vmem>>, vector<8x8xf32>,
    %283 = vector.extract_strided_slice %242 {offsets = [0, 8], sizes = [8, 8], strides = [1, 1]} : vector<8x32xf32> to vector<8x8xf32>
    %cst_136 = arith.constant 0.353553385 : f32
    %284 = vector.broadcast %cst_136 : f32 to vector<8x8xf32>
    %285 = arith.mulf %283, %284 : vector<8x8xf32>
    %286 = arith.truncf %285 : vector<8x8xf32> to vector<8x8xbf16>
    %287 = vector.extract_strided_slice %250 {offsets = [0, 8], sizes = [8, 8], strides = [1, 1]} : vector<8x32xf32> to vector<8x8xf32>
    %288 = arith.truncf %287 : vector<8x8xf32> to vector<8x8xbf16>
    %289 = vector.extract_strided_slice %258 {offsets = [0, 8], sizes = [8, 8], strides = [1, 1]} : vector<8x32xf32> to vector<8x8xf32>
    %290 = arith.truncf %289 : vector<8x8xf32> to vector<8x8xbf16>
    %cst_137 = arith.constant dense<0.000000e+00> : vector<8x8xf32>
    %291 = tpu.matmul %286, %288, %cst_137 {dimension_numbers = #tpu.dot_dimension_numbers<[1], [1], [0], [0], [0, 0, 1, 0], [], []>} : vector<8x8xbf16>, vector<8x8xbf16>, vector<8x8xf32> -> vector<8x8xf32>
    %292 = vector.broadcast %234 : vector<1x8xf32> to vector<8x8xf32>
    %293 = arith.addf %291, %292 : vector<8x8xf32>
    %cst_138 = arith.constant dense<0xFF800000> : vector<8xf32>
    %294 = vector.multi_reduction <maximumf>, %293, %cst_138 [1] : vector<8x8xf32> to vector<8xf32>
    %295 = vector.shape_cast %294 : vector<8xf32> to vector<8x1xf32>
    %296 = vector.broadcast %295 : vector<8x1xf32> to vector<8x8xf32>
    %297 = arith.subf %293, %296 : vector<8x8xf32>
    %298 = math.exp %297 : vector<8x8xf32>
    %cst_139 = arith.constant dense<0.000000e+00> : vector<8xf32>
    %299 = vector.multi_reduction <add>, %298, %cst_139 [1] : vector<8x8xf32> to vector<8xf32>
    %300 = vector.shape_cast %299 : vector<8xf32> to vector<8x1xf32>
    %301 = tpu.reciprocal %300 {approx = true} : vector<8x1xf32> -> vector<8x1xf32>
    %302 = vector.broadcast %301 : vector<8x1xf32> to vector<8x8xf32>
    %303 = arith.mulf %298, %302 : vector<8x8xf32>
    %304 = arith.truncf %303 : vector<8x8xf32> to vector<8x8xbf16>
    %cst_140 = arith.constant dense<0.000000e+00> : vector<8x8xf32>
    %305 = tpu.matmul %304, %290, %cst_140 {dimension_numbers = #tpu.dot_dimension_numbers<[1], [0], [0], [1], [0, 0, 1, 1], [], []>} : vector<8x8xbf16>, vector<8x8xbf16>, vector<8x8xf32> -> vector<8x8xf32>
    %c0_141 = arith.constant 0 : index
    %c8_142 = arith.constant 8 : index
    %306 = vector.load %arg24[%c0_141, %c8_142] : memref<8x32xf32, #tpu.memory_space<vmem>>, vector<8x8xf32>
    tpu.vector_store %arg24[%c0_141, %c8_142], %305 {strides = array<i32>} : memref<8x32xf32, #tpu.memory_space<vmem>>, vector<8x8xf32>,
    %307 = vector.extract_strided_slice %242 {offsets = [0, 16], sizes = [8, 8], strides = [1, 1]} : vector<8x32xf32> to vector<8x8xf32>
    %cst_143 = arith.constant 0.353553385 : f32
    %308 = vector.broadcast %cst_143 : f32 to vector<8x8xf32>
    %309 = arith.mulf %307, %308 : vector<8x8xf32>
    %310 = arith.truncf %309 : vector<8x8xf32> to vector<8x8xbf16>
    %311 = vector.extract_strided_slice %250 {offsets = [0, 16], sizes = [8, 8], strides = [1, 1]} : vector<8x32xf32> to vector<8x8xf32>
    %312 = arith.truncf %311 : vector<8x8xf32> to vector<8x8xbf16>
    %313 = vector.extract_strided_slice %258 {offsets = [0, 16], sizes = [8, 8], strides = [1, 1]} : vector<8x32xf32> to vector<8x8xf32>
    %314 = arith.truncf %313 : vector<8x8xf32> to vector<8x8xbf16>
    %cst_144 = arith.constant dense<0.000000e+00> : vector<8x8xf32>
    %315 = tpu.matmul %310, %312, %cst_144 {dimension_numbers = #tpu.dot_dimension_numbers<[1], [1], [0], [0], [0, 0, 1, 0], [], []>} : vector<8x8xbf16>, vector<8x8xbf16>, vector<8x8xf32> -> vector<8x8xf32>
    %316 = vector.broadcast %234 : vector<1x8xf32> to vector<8x8xf32>
    %317 = arith.addf %315, %316 : vector<8x8xf32>
    %cst_145 = arith.constant dense<0xFF800000> : vector<8xf32>
    %318 = vector.multi_reduction <maximumf>, %317, %cst_145 [1] : vector<8x8xf32> to vector<8xf32>
    %319 = vector.shape_cast %318 : vector<8xf32> to vector<8x1xf32>
    %320 = vector.broadcast %319 : vector<8x1xf32> to vector<8x8xf32>
    %321 = arith.subf %317, %320 : vector<8x8xf32>
    %322 = math.exp %321 : vector<8x8xf32>
    %cst_146 = arith.constant dense<0.000000e+00> : vector<8xf32>
    %323 = vector.multi_reduction <add>, %322, %cst_146 [1] : vector<8x8xf32> to vector<8xf32>
    %324 = vector.shape_cast %323 : vector<8xf32> to vector<8x1xf32>
    %325 = tpu.reciprocal %324 {approx = true} : vector<8x1xf32> -> vector<8x1xf32>
    %326 = vector.broadcast %325 : vector<8x1xf32> to vector<8x8xf32>
    %327 = arith.mulf %322, %326 : vector<8x8xf32>
    %328 = arith.truncf %327 : vector<8x8xf32> to vector<8x8xbf16>
    %cst_147 = arith.constant dense<0.000000e+00> : vector<8x8xf32>
    %329 = tpu.matmul %328, %314, %cst_147 {dimension_numbers = #tpu.dot_dimension_numbers<[1], [0], [0], [1], [0, 0, 1, 1], [], []>} : vector<8x8xbf16>, vector<8x8xbf16>, vector<8x8xf32> -> vector<8x8xf32>
    %c0_148 = arith.constant 0 : index
    %c16_149 = arith.constant 16 : index
    %330 = vector.load %arg24[%c0_148, %c16_149] : memref<8x32xf32, #tpu.memory_space<vmem>>, vector<8x8xf32>
    tpu.vector_store %arg24[%c0_148, %c16_149], %329 {strides = array<i32>} : memref<8x32xf32, #tpu.memory_space<vmem>>, vector<8x8xf32>,
    %331 = vector.extract_strided_slice %242 {offsets = [0, 24], sizes = [8, 8], strides = [1, 1]} : vector<8x32xf32> to vector<8x8xf32>
    %cst_150 = arith.constant 0.353553385 : f32
    %332 = vector.broadcast %cst_150 : f32 to vector<8x8xf32>
    %333 = arith.mulf %331, %332 : vector<8x8xf32>
    %334 = arith.truncf %333 : vector<8x8xf32> to vector<8x8xbf16>
    %335 = vector.extract_strided_slice %250 {offsets = [0, 24], sizes = [8, 8], strides = [1, 1]} : vector<8x32xf32> to vector<8x8xf32>
    %336 = arith.truncf %335 : vector<8x8xf32> to vector<8x8xbf16>
    %337 = vector.extract_strided_slice %258 {offsets = [0, 24], sizes = [8, 8], strides = [1, 1]} : vector<8x32xf32> to vector<8x8xf32>
    %338 = arith.truncf %337 : vector<8x8xf32> to vector<8x8xbf16>
    %cst_151 = arith.constant dense<0.000000e+00> : vector<8x8xf32>
    %339 = tpu.matmul %334, %336, %cst_151 {dimension_numbers = #tpu.dot_dimension_numbers<[1], [1], [0], [0], [0, 0, 1, 0], [], []>} : vector<8x8xbf16>, vector<8x8xbf16>, vector<8x8xf32> -> vector<8x8xf32>
    %340 = vector.broadcast %234 : vector<1x8xf32> to vector<8x8xf32>
    %341 = arith.addf %339, %340 : vector<8x8xf32>
    %cst_152 = arith.constant dense<0xFF800000> : vector<8xf32>
    %342 = vector.multi_reduction <maximumf>, %341, %cst_152 [1] : vector<8x8xf32> to vector<8xf32>
    %343 = vector.shape_cast %342 : vector<8xf32> to vector<8x1xf32>
    %344 = vector.broadcast %343 : vector<8x1xf32> to vector<8x8xf32>
    %345 = arith.subf %341, %344 : vector<8x8xf32>
    %346 = math.exp %345 : vector<8x8xf32>
    %cst_153 = arith.constant dense<0.000000e+00> : vector<8xf32>
    %347 = vector.multi_reduction <add>, %346, %cst_153 [1] : vector<8x8xf32> to vector<8xf32>
    %348 = vector.shape_cast %347 : vector<8xf32> to vector<8x1xf32>
    %349 = tpu.reciprocal %348 {approx = true} : vector<8x1xf32> -> vector<8x1xf32>
    %350 = vector.broadcast %349 : vector<8x1xf32> to vector<8x8xf32>
    %351 = arith.mulf %346, %350 : vector<8x8xf32>
    %352 = arith.truncf %351 : vector<8x8xf32> to vector<8x8xbf16>
    %cst_154 = arith.constant dense<0.000000e+00> : vector<8x8xf32>
    %353 = tpu.matmul %352, %338, %cst_154 {dimension_numbers = #tpu.dot_dimension_numbers<[1], [0], [0], [1], [0, 0, 1, 1], [], []>} : vector<8x8xbf16>, vector<8x8xbf16>, vector<8x8xf32> -> vector<8x8xf32>
    %c0_155 = arith.constant 0 : index
    %c24_156 = arith.constant 24 : index
    %354 = vector.load %arg24[%c0_155, %c24_156] : memref<8x32xf32, #tpu.memory_space<vmem>>, vector<8x8xf32>
    tpu.vector_store %arg24[%c0_155, %c24_156], %353 {strides = array<i32>} : memref<8x32xf32, #tpu.memory_space<vmem>>, vector<8x8xf32>,
    %c0_157 = arith.constant 0 : index
    %c0_158 = arith.constant 0 : index
    %355 = vector.load %arg24[%c0_157, %c0_158] : memref<8x32xf32, #tpu.memory_space<vmem>>, vector<8x32xf32>
    %356 = arith.truncf %355 : vector<8x32xf32> to vector<8x32xbf16>
    %c0_159 = arith.constant 0 : index
    %c0_160 = arith.constant 0 : index
    %357 = vector.load %arg15[%c0_159, %c0_160] : memref<32x32xbf16, #tpu.memory_space<vmem>>, vector<32x32xbf16>
    %cst_161 = arith.constant dense<0.000000e+00> : vector<8x32xf32>
    %358 = tpu.matmul %356, %357, %cst_161 {dimension_numbers = #tpu.dot_dimension_numbers<[1], [0], [0], [1], [0, 0, 1, 1], [], []>} : vector<8x32xbf16>, vector<32x32xbf16>, vector<8x32xf32> -> vector<8x32xf32>
    %c0_162 = arith.constant 0 : index
    %c0_163 = arith.constant 0 : index
    %359 = vector.load %arg16[%c0_162, %c0_163] : memref<1x32xf32, #tpu.memory_space<vmem>>, vector<1x32xf32>
    %360 = vector.broadcast %359 : vector<1x32xf32> to vector<8x32xf32>
    %361 = arith.addf %358, %360 : vector<8x32xf32>
    %c4 = arith.constant 4 : index
    %c0_164 = arith.constant 0 : index
    %c0_165 = arith.constant 0 : index
    %362 = vector.load %arg7[%c4, %c0_164, %c0_165] : memref<5x1x32xf32, #tpu.memory_space<vmem>>, vector<1x1x32xf32>
    %363 = vector.shape_cast %362 : vector<1x1x32xf32> to vector<1x32xf32>
    %c4_166 = arith.constant 4 : index
    %c0_167 = arith.constant 0 : index
    %c0_168 = arith.constant 0 : index
    %364 = vector.load %arg8[%c4_166, %c0_167, %c0_168] : memref<5x1x32xf32, #tpu.memory_space<vmem>>, vector<1x1x32xf32>
    %365 = vector.shape_cast %364 : vector<1x1x32xf32> to vector<1x32xf32>
    %cst_169 = arith.constant dense<0.000000e+00> : vector<8xf32>
    %366 = vector.multi_reduction <add>, %361, %cst_169 [1] : vector<8x32xf32> to vector<8xf32>
    %367 = vector.shape_cast %366 : vector<8xf32> to vector<8x1xf32>
    %cst_170 = arith.constant 3.200000e+01 : f32
    %368 = vector.broadcast %cst_170 : f32 to vector<8x1xf32>
    %369 = arith.divf %367, %368 : vector<8x1xf32>
    %370 = vector.broadcast %369 : vector<8x1xf32> to vector<8x32xf32>
    %371 = arith.subf %361, %370 : vector<8x32xf32>
    %372 = arith.mulf %371, %371 : vector<8x32xf32>
    %cst_171 = arith.constant dense<0.000000e+00> : vector<8xf32>
    %373 = vector.multi_reduction <add>, %372, %cst_171 [1] : vector<8x32xf32> to vector<8xf32>
    %374 = vector.shape_cast %373 : vector<8xf32> to vector<8x1xf32>
    %cst_172 = arith.constant 3.200000e+01 : f32
    %375 = vector.broadcast %cst_172 : f32 to vector<8x1xf32>
    %376 = arith.divf %374, %375 : vector<8x1xf32>
    %cst_173 = arith.constant 9.99999974E-6 : f32
    %377 = vector.broadcast %cst_173 : f32 to vector<8x1xf32>
    %378 = arith.addf %376, %377 : vector<8x1xf32>
    %379 = math.rsqrt %378 : vector<8x1xf32>
    %380 = vector.broadcast %379 : vector<8x1xf32> to vector<8x32xf32>
    %381 = arith.mulf %371, %380 : vector<8x32xf32>
    %382 = vector.broadcast %363 : vector<1x32xf32> to vector<8x32xf32>
    %383 = arith.mulf %381, %382 : vector<8x32xf32>
    %384 = vector.broadcast %365 : vector<1x32xf32> to vector<8x32xf32>
    %385 = arith.addf %383, %384 : vector<8x32xf32>
    %386 = arith.addf %206, %385 : vector<8x32xf32>
    %c2_174 = arith.constant 2 : index
    %c0_175 = arith.constant 0 : index
    %c0_176 = arith.constant 0 : index
    %387 = vector.load %arg7[%c2_174, %c0_175, %c0_176] : memref<5x1x32xf32, #tpu.memory_space<vmem>>, vector<1x1x32xf32>
    %388 = vector.shape_cast %387 : vector<1x1x32xf32> to vector<1x32xf32>
    %c2_177 = arith.constant 2 : index
    %c0_178 = arith.constant 0 : index
    %c0_179 = arith.constant 0 : index
    %389 = vector.load %arg8[%c2_177, %c0_178, %c0_179] : memref<5x1x32xf32, #tpu.memory_space<vmem>>, vector<1x1x32xf32>
    %390 = vector.shape_cast %389 : vector<1x1x32xf32> to vector<1x32xf32>
    %cst_180 = arith.constant dense<0.000000e+00> : vector<8xf32>
    %391 = vector.multi_reduction <add>, %386, %cst_180 [1] : vector<8x32xf32> to vector<8xf32>
    %392 = vector.shape_cast %391 : vector<8xf32> to vector<8x1xf32>
    %cst_181 = arith.constant 3.200000e+01 : f32
    %393 = vector.broadcast %cst_181 : f32 to vector<8x1xf32>
    %394 = arith.divf %392, %393 : vector<8x1xf32>
    %395 = vector.broadcast %394 : vector<8x1xf32> to vector<8x32xf32>
    %396 = arith.subf %386, %395 : vector<8x32xf32>
    %397 = arith.mulf %396, %396 : vector<8x32xf32>
    %cst_182 = arith.constant dense<0.000000e+00> : vector<8xf32>
    %398 = vector.multi_reduction <add>, %397, %cst_182 [1] : vector<8x32xf32> to vector<8xf32>
    %399 = vector.shape_cast %398 : vector<8xf32> to vector<8x1xf32>
    %cst_183 = arith.constant 3.200000e+01 : f32
    %400 = vector.broadcast %cst_183 : f32 to vector<8x1xf32>
    %401 = arith.divf %399, %400 : vector<8x1xf32>
    %cst_184 = arith.constant 9.99999974E-6 : f32
    %402 = vector.broadcast %cst_184 : f32 to vector<8x1xf32>
    %403 = arith.addf %401, %402 : vector<8x1xf32>
    %404 = math.rsqrt %403 : vector<8x1xf32>
    %405 = vector.broadcast %404 : vector<8x1xf32> to vector<8x32xf32>
    %406 = arith.mulf %396, %405 : vector<8x32xf32>
    %407 = vector.broadcast %388 : vector<1x32xf32> to vector<8x32xf32>
    %408 = arith.mulf %406, %407 : vector<8x32xf32>
    %409 = vector.broadcast %390 : vector<1x32xf32> to vector<8x32xf32>
    %410 = arith.addf %408, %409 : vector<8x32xf32>
    %411 = arith.truncf %410 : vector<8x32xf32> to vector<8x32xbf16>
    %c0_185 = arith.constant 0 : index
    %c0_186 = arith.constant 0 : index
    %412 = vector.load %arg17[%c0_185, %c0_186] : memref<32x64xbf16, #tpu.memory_space<vmem>>, vector<32x64xbf16>
    %cst_187 = arith.constant dense<0.000000e+00> : vector<8x64xf32>
    %413 = tpu.matmul %411, %412, %cst_187 {dimension_numbers = #tpu.dot_dimension_numbers<[1], [0], [0], [1], [0, 0, 1, 1], [], []>} : vector<8x32xbf16>, vector<32x64xbf16>, vector<8x64xf32> -> vector<8x64xf32>
    %c0_188 = arith.constant 0 : index
    %c0_189 = arith.constant 0 : index
    %414 = vector.load %arg18[%c0_188, %c0_189] : memref<1x64xf32, #tpu.memory_space<vmem>>, vector<1x64xf32>
    %415 = vector.broadcast %414 : vector<1x64xf32> to vector<8x64xf32>
    %416 = arith.addf %413, %415 : vector<8x64xf32>
    %cst_190 = arith.constant 0.000000e+00 : f32
    %417 = vector.broadcast %cst_190 : f32 to vector<8x64xf32>
    %418 = arith.maximumf %416, %417 : vector<8x64xf32>
    %c0_191 = arith.constant 0 : index
    %c0_192 = arith.constant 0 : index
    %419 = vector.load %arg19[%c0_191, %c0_192] : memref<1x64xf32, #tpu.memory_space<vmem>>, vector<1x64xf32>
    %c0_193 = arith.constant 0 : index
    %c0_194 = arith.constant 0 : index
    %420 = vector.load %arg20[%c0_193, %c0_194] : memref<1x64xf32, #tpu.memory_space<vmem>>, vector<1x64xf32>
    %cst_195 = arith.constant dense<0.000000e+00> : vector<8xf32>
    %421 = vector.multi_reduction <add>, %418, %cst_195 [1] : vector<8x64xf32> to vector<8xf32>
    %422 = vector.shape_cast %421 : vector<8xf32> to vector<8x1xf32>
    %cst_196 = arith.constant 6.400000e+01 : f32
    %423 = vector.broadcast %cst_196 : f32 to vector<8x1xf32>
    %424 = arith.divf %422, %423 : vector<8x1xf32>
    %425 = vector.broadcast %424 : vector<8x1xf32> to vector<8x64xf32>
    %426 = arith.subf %418, %425 : vector<8x64xf32>
    %427 = arith.mulf %426, %426 : vector<8x64xf32>
    %cst_197 = arith.constant dense<0.000000e+00> : vector<8xf32>
    %428 = vector.multi_reduction <add>, %427, %cst_197 [1] : vector<8x64xf32> to vector<8xf32>
    %429 = vector.shape_cast %428 : vector<8xf32> to vector<8x1xf32>
    %cst_198 = arith.constant 6.400000e+01 : f32
    %430 = vector.broadcast %cst_198 : f32 to vector<8x1xf32>
    %431 = arith.divf %429, %430 : vector<8x1xf32>
    %cst_199 = arith.constant 9.99999974E-6 : f32
    %432 = vector.broadcast %cst_199 : f32 to vector<8x1xf32>
    %433 = arith.addf %431, %432 : vector<8x1xf32>
    %434 = math.rsqrt %433 : vector<8x1xf32>
    %435 = vector.broadcast %434 : vector<8x1xf32> to vector<8x64xf32>
    %436 = arith.mulf %426, %435 : vector<8x64xf32>
    %437 = vector.broadcast %419 : vector<1x64xf32> to vector<8x64xf32>
    %438 = arith.mulf %436, %437 : vector<8x64xf32>
    %439 = vector.broadcast %420 : vector<1x64xf32> to vector<8x64xf32>
    %440 = arith.addf %438, %439 : vector<8x64xf32>
    %441 = arith.truncf %440 : vector<8x64xf32> to vector<8x64xbf16>
    %c0_200 = arith.constant 0 : index
    %c0_201 = arith.constant 0 : index
    %442 = vector.load %arg21[%c0_200, %c0_201] : memref<64x32xbf16, #tpu.memory_space<vmem>>, vector<64x32xbf16>
    %cst_202 = arith.constant dense<0.000000e+00> : vector<8x32xf32>
    %443 = tpu.matmul %441, %442, %cst_202 {dimension_numbers = #tpu.dot_dimension_numbers<[1], [0], [0], [1], [0, 0, 1, 1], [], []>} : vector<8x64xbf16>, vector<64x32xbf16>, vector<8x32xf32> -> vector<8x32xf32>
    %c0_203 = arith.constant 0 : index
    %c0_204 = arith.constant 0 : index
    %444 = vector.load %arg22[%c0_203, %c0_204] : memref<1x32xf32, #tpu.memory_space<vmem>>, vector<1x32xf32>
    %445 = vector.broadcast %444 : vector<1x32xf32> to vector<8x32xf32>
    %446 = arith.addf %443, %445 : vector<8x32xf32>
    %447 = arith.addf %386, %446 : vector<8x32xf32>
    %c0_205 = arith.constant 0 : index
    %c0_206 = arith.constant 0 : index
    %c0_207 = arith.constant 0 : index
    %448 = vector.load %arg23[%c0_205, %c0_206, %c0_207] : memref<1x8x32xf32, #tpu.memory_space<vmem>>, vector<1x8x32xf32>
    %449 = vector.shape_cast %448 : vector<1x8x32xf32> to vector<8x32xf32>
    %450 = vector.shape_cast %447 : vector<8x32xf32> to vector<1x8x32xf32>
    tpu.vector_store %arg23[%c0_205, %c0_206, %c0_207], %450 {strides = array<i32>} : memref<1x8x32xf32, #tpu.memory_space<vmem>>, vector<1x8x32xf32>,
    return
  }
  func.func @transform_0(%arg0: i32, %arg1: i32) -> (i32, i32, i32) {
    %c0_i32 = arith.constant 0 : i32
    %c0_i32_0 = arith.constant 0 : i32
    %c0_i32_1 = arith.constant 0 : i32
    return %arg0, %c0_i32, %c0_i32_0 : i32, i32, i32
  }
  func.func @transform_1(%arg0: i32, %arg1: i32) -> (i32, i32) {
    %c0_i32 = arith.constant 0 : i32
    %c0_i32_0 = arith.constant 0 : i32
    %c0_i32_1 = arith.constant 0 : i32
    return %c0_i32, %c0_i32_0 : i32, i32
  }
  func.func @transform_2(%arg0: i32, %arg1: i32) -> (i32, i32, i32) {
    %c0_i32 = arith.constant 0 : i32
    %c0_i32_0 = arith.constant 0 : i32
    %c0_i32_1 = arith.constant 0 : i32
    return %arg0, %c0_i32, %c0_i32_0 : i32, i32, i32
  }
  func.func @transform_3(%arg0: i32, %arg1: i32) -> (i32, i32) {
    %c0_i32 = arith.constant 0 : i32
    %c0_i32_0 = arith.constant 0 : i32
    %c0_i32_1 = arith.constant 0 : i32
    return %c0_i32, %c0_i32_0 : i32, i32
  }
  func.func @transform_4(%arg0: i32, %arg1: i32) -> (i32, i32, i32) {
    %c0_i32 = arith.constant 0 : i32
    %c0_i32_0 = arith.constant 0 : i32
    %c0_i32_1 = arith.constant 0 : i32
    return %arg0, %c0_i32, %c0_i32_0 : i32, i32, i32
  }
  func.func @transform_5(%arg0: i32, %arg1: i32) -> (i32, i32, i32) {
    %c0_i32 = arith.constant 0 : i32
    %c0_i32_0 = arith.constant 0 : i32
    %c0_i32_1 = arith.constant 0 : i32
    %c0_i32_2 = arith.constant 0 : i32
    return %c0_i32, %c0_i32_0, %c0_i32_1 : i32, i32, i32
  }
  func.func @transform_6(%arg0: i32, %arg1: i32) -> (i32, i32, i32) {
    %c0_i32 = arith.constant 0 : i32
    %c0_i32_0 = arith.constant 0 : i32
    %c0_i32_1 = arith.constant 0 : i32
    %c0_i32_2 = arith.constant 0 : i32
    return %c0_i32, %c0_i32_0, %c0_i32_1 : i32, i32, i32
  }
  func.func @transform_7(%arg0: i32, %arg1: i32) -> (i32, i32, i32) {
    %c0_i32 = arith.constant 0 : i32
    %c0_i32_0 = arith.constant 0 : i32
    %c0_i32_1 = arith.constant 0 : i32
    %c0_i32_2 = arith.constant 0 : i32
    return %c0_i32, %c0_i32_0, %c0_i32_1 : i32, i32, i32
  }
  func.func @transform_8(%arg0: i32, %arg1: i32) -> (i32, i32, i32) {
    %c0_i32 = arith.constant 0 : i32
    %c0_i32_0 = arith.constant 0 : i32
    %c0_i32_1 = arith.constant 0 : i32
    %c0_i32_2 = arith.constant 0 : i32
    return %c0_i32, %c0_i32_0, %c0_i32_1 : i32, i32, i32
  }
  func.func @transform_9(%arg0: i32, %arg1: i32) -> (i32, i32) {
    %c0_i32 = arith.constant 0 : i32
    %c0_i32_0 = arith.constant 0 : i32
    %c0_i32_1 = arith.constant 0 : i32
    return %c0_i32, %c0_i32_0 : i32, i32
  }
  func.func @transform_10(%arg0: i32, %arg1: i32) -> (i32, i32) {
    %c0_i32 = arith.constant 0 : i32
    %c0_i32_0 = arith.constant 0 : i32
    %c0_i32_1 = arith.constant 0 : i32
    return %c0_i32, %c0_i32_0 : i32, i32
  }
  func.func @transform_11(%arg0: i32, %arg1: i32) -> (i32, i32, i32) {
    %c0_i32 = arith.constant 0 : i32
    %c0_i32_0 = arith.constant 0 : i32
    %c0_i32_1 = arith.constant 0 : i32
    %c0_i32_2 = arith.constant 0 : i32
    return %c0_i32, %c0_i32_0, %c0_i32_1 : i32, i32, i32
  }
  func.func @transform_12(%arg0: i32, %arg1: i32) -> (i32, i32, i32) {
    %c0_i32 = arith.constant 0 : i32
    %c0_i32_0 = arith.constant 0 : i32
    %c0_i32_1 = arith.constant 0 : i32
    %c0_i32_2 = arith.constant 0 : i32
    return %c0_i32, %c0_i32_0, %c0_i32_1 : i32, i32, i32
  }
  func.func @transform_13(%arg0: i32, %arg1: i32) -> (i32, i32) {
    %c0_i32 = arith.constant 0 : i32
    %c0_i32_0 = arith.constant 0 : i32
    %c0_i32_1 = arith.constant 0 : i32
    return %c0_i32, %c0_i32_0 : i32, i32
  }
  func.func @transform_14(%arg0: i32, %arg1: i32) -> (i32, i32) {
    %c0_i32 = arith.constant 0 : i32
    %c0_i32_0 = arith.constant 0 : i32
    %c0_i32_1 = arith.constant 0 : i32
    return %c0_i32, %c0_i32_0 : i32, i32
  }
  func.func @transform_15(%arg0: i32, %arg1: i32) -> (i32, i32) {
    %c0_i32 = arith.constant 0 : i32
    %c0_i32_0 = arith.constant 0 : i32
    %c0_i32_1 = arith.constant 0 : i32
    return %c0_i32, %c0_i32_0 : i32, i32
  }
  func.func @transform_16(%arg0: i32, %arg1: i32) -> (i32, i32) {
    %c0_i32 = arith.constant 0 : i32
    %c0_i32_0 = arith.constant 0 : i32
    %c0_i32_1 = arith.constant 0 : i32
    return %c0_i32, %c0_i32_0 : i32, i32
  }
  func.func @transform_17(%arg0: i32, %arg1: i32) -> (i32, i32) {
    %c0_i32 = arith.constant 0 : i32
    %c0_i32_0 = arith.constant 0 : i32
    %c0_i32_1 = arith.constant 0 : i32
    return %c0_i32, %c0_i32_0 : i32, i32
  }
  func.func @transform_18(%arg0: i32, %arg1: i32) -> (i32, i32) {
    %c0_i32 = arith.constant 0 : i32
    %c0_i32_0 = arith.constant 0 : i32
    %c0_i32_1 = arith.constant 0 : i32
    return %c0_i32, %c0_i32_0 : i32, i32
  }
  func.func @transform_19(%arg0: i32, %arg1: i32) -> (i32, i32) {
    %c0_i32 = arith.constant 0 : i32
    %c0_i32_0 = arith.constant 0 : i32
    %c0_i32_1 = arith.constant 0 : i32
    return %c0_i32, %c0_i32_0 : i32, i32
  }
  func.func @transform_20(%arg0: i32, %arg1: i32) -> (i32, i32) {
    %c0_i32 = arith.constant 0 : i32
    %c0_i32_0 = arith.constant 0 : i32
    %c0_i32_1 = arith.constant 0 : i32
    return %c0_i32, %c0_i32_0 : i32, i32
  }
  func.func @transform_21(%arg0: i32, %arg1: i32) -> (i32, i32, i32) {
    %c0_i32 = arith.constant 0 : i32
    %c0_i32_0 = arith.constant 0 : i32
    return %arg0, %arg1, %c0_i32 : i32, i32, i32
  }
}

</mosaic_0001>

<bundles_post_ra>
// kernel: transformer_decoder_layer.1
= control target key start
LH: loop header
LB: loop body
LE: loop exit
PB: predicated region body
PF: predicated region fallthrough
CT: control target
= control target key end

     0   :  { %s3302_s25 = smov 0   ;;  %s3304_s26 = smov 0   ;;  %s3739_s0 = inlined_call_operand.vmem [shape: f32[2,16,32], index: 0, kind: input, shape index: {}]   ;;  %s3740_s1 = inlined_call_operand.vmem [shape: f32[16,32], index: 1, kind: input, shape index: {}]   ;;  %s3741_s2 = inlined_call_operand.vmem [shape: f32[2,8,32], index: 2, kind: input, shape index: {}]   ;;  %s3742_s3 = inlined_call_operand.vmem [shape: f32[8,32], index: 3, kind: input, shape index: {}]   ;;  %s3743_s4 = inlined_call_operand.vmem [shape: f32[2,1,8], index: 4, kind: input, shape index: {}]   ;;  %s3744_s5 = inlined_call_operand.vmem [shape: f32[5,1,32], index: 5, kind: input, shape index: {}]   ;;  %s3745_s6 = inlined_call_operand.vmem [shape: f32[5,1,32], index: 6, kind: input, shape index: {}]   ;;  %s3746_s7 = inlined_call_operand.vmem [shape: bf16[3,32,32], index: 7, kind: input, shape index: {}]   ;;  %s3747_s8 = inlined_call_operand.vmem [shape: f32[3,1,32], index: 8, kind: input, shape index: {}]   ;;  %s3748_s9 = inlined_call_operand.vmem [shape: bf16[32,32], index: 9, kind: input, shape index: {}]   ;;  %s3749_s10 = inlined_call_operand.vmem [shape: f32[1,32], index: 10, kind: input, shape index: {}]   ;;  %s3750_s11 = inlined_call_operand.vmem [shape: bf16[3,32,32], index: 11, kind: input, shape index: {}]   ;;  %s3751_s12 = inlined_call_operand.vmem [shape: f32[3,1,32], index: 12, kind: input, shape index: {}]   ;;  %s3752_s13 = inlined_call_operand.vmem [shape: bf16[32,32], index: 13, kind: input, shape index: {}]   ;;  %s3753_s14 = inlined_call_operand.vmem [shape: f32[1,32], index: 14, kind: input, shape index: {}]   ;;  %s3754_s15 = inlined_call_operand.vmem [shape: bf16[32,64], index: 15, kind: input, shape index: {}]   ;;  %s3755_s16 = inlined_call_operand.vmem [shape: f32[1,64], index: 16, kind: input, shape index: {}]   ;;  %s3756_s17 = inlined_call_operand.vmem [shape: f32[1,64], index: 17, kind: input, shape index: {}]   ;;  %s3757_s18 = inlined_call_operand.vmem [shape: f32[1,64], index: 18, kind: input, shape index: {}]   ;;  %s3758_s19 = inlined_call_operand.vmem [shape: bf16[64,32], index: 19, kind: input, shape index: {}]   ;;  %s3759_s20 = inlined_call_operand.vmem [shape: f32[1,32], index: 20, kind: input, shape index: {}]   ;;  %s3760_s21 = inlined_call_operand.vmem [shape: f32[2,16,32], index: 21, kind: output, shape index: {}]  }
   0x1   :  { %3775 = sst [smem:[#allocation7_spill]] %s3739_s0  ;;  %s3306_s27 = smov 0  }
   0x2   :  { %3776 = sst [smem:[#allocation8_spill]] %s3740_s1 }
   0x3   :  { %3777 = sst [smem:[#allocation9_spill]] %s3741_s2  ;;  %s3300_s2 = smov 0  }
   0x4   :  { %3778 = sst [smem:[#allocation10_spill]] %s3742_s3  ;;  %s3308_s3 = smov 0  }
   0x5   :  { %3779 = sst [smem:[#allocation11_spill]] %s3743_s4 }
   0x6   :  { %3780 = sst [smem:[#allocation12_spill]] %s3744_s5 }
   0x7   :  { %3781 = sst [smem:[#allocation13_spill]] %s3746_s7 }
   0x8   :  { %3782 = sst [smem:[#allocation14_spill]] %s3747_s8 }
   0x9 LB: > { %3783 = sst [smem:[#allocation3_spill]] %s3172_s26  ;;  %s40_s28 = sadd.s32 1, %s3172_s26  ;;  %s3180_s3 = sphi %s3308_s3, %s31_s3   ;;  %s3176_s27 = sphi %s3306_s27, %s3805_s27   ;;  %s3172_s26 = sphi %s3304_s26, %s3804_s26   ;;  %s3168_s25 = sphi %s3302_s25, %s3803_s25   ;;  %s3164_s2 = sphi %s3300_s2, %s3802_s2  }
   0xa   : > { %3784 = sst [smem:[#allocation4_spill]] %s3176_s27  ;;  %s43_s29 = sadd.s32 1, %s3176_s27 }
   0xb   : > { %p41_p0 = scmp.ge.s32.totalorder %s40_s28, 2  ;;  %p2671_p1 = scmp.ge.s32.totalorder %s3180_s3, 1 }
   0xc   : > { %p618_p2 = scmp.lt.s32.totalorder %s3180_s3, 5 }
   0xd   : > { %s3807_s28 = smov (%p41_p0, %s40_s28), 0  ;;  %s3809_s29 = smov (!%p41_p0, %s43_s29), %s3176_s27 }
   0xe   : > { %3785 = sst [smem:[#allocation5_spill]] %s3807_s28  ;;  %p619_p3 = pnand %p2671_p1, %p618_p2 }
   0xf   : > { %p45_p4 = scmp.ge.s32.totalorder %s3809_s29, 2  ;;  %p688_p5 = scmp.lt.s32.totalorder (!%p619_p3), %s3168_s25, 1 }
  0x10   : > { %622 = sbr.rel (%p619_p3) target bundleno = 5075 (0x13d3), region = 104  ;;  %s3763_s0 = sshll.u32 (!%p619_p3), %s3164_s2, 3 }
  0x11   : > { %s3811_s29 = smov (%p45_p4, %s3809_s29), 0  ;;  %s3787_s22 = sld [smem:[#allocation7_spill]] (!%p619_p3) }
  0x12   : > { %3786 = sst [smem:[#allocation6_spill]] %s3811_s29  ;;  %s3769_s5 = smov (!%p619_p3), 112  }
  0x13   : > { %s3788_s7 = sld [smem:[#allocation13_spill]] (!%p619_p3)  ;;  %s3771_s26 = smov (!%p619_p3), 104  }
  0x14   : > { %s3791_s29 = sld [smem:[#allocation8_spill]] (!%p619_p3)  ;;  %s3768_s27 = smov (!%p619_p3), 8  }
  0x15   : > { %s3813_s25 = smov (!%p688_p5, %s3168_s25), 1  ;;  %vm722_vm0 = vcmask 261120   ;;  %v3182_v23 = vmov 0.0   ;;  %vm3183_vm1 = vmmov 0   ;;  %v2679_v40 = vld [vmem:[%s3745_s6] ss:$0 sm:$0xff] }
  0x16   : > { %s2779_s4 = sshll.u32 %s3813_s25, 4  ;;  %2844 = vmatprep.subr.bf16.mxu0 %v3182_v23  ;;  %2852 = vmatprep.subr.bf16.mxu1 %v3182_v23  ;;  %s3792_s8 = sld [smem:[#allocation14_spill]]  ;;  %vm995_vm2 = vcmask 64512   ;;  %vm1042_vm3 = vcmask 130048   ;;  %vm1214_vm4 = vcmask 130112   ;;  %vm1328_vm5 = vcmask 195712  }
  0x17   : > { %s692_s23 = scalar_lea.vmem %s3787_s22, %s2779_s4  ;;  %2848 = vmatprep.mubr.msk.bf16.mxu0 %vm3183_vm1, %v3182_v23  ;;  %2856 = vmatprep.mubr.msk.bf16.mxu1 %vm3183_vm1, %v3182_v23  ;;  %s3789_s4 = sld [smem:[#allocation12_spill]]  ;;  %vm1442_vm6 = vcmask 261312   ;;  %vm1854_vm7 = vcmask 1043456   ;;  %vm2448_vm8 = vcmask 523264  }
  0x18   : > { %v712_v0 = vld [vmem:[%s692_s23] sm:$0xff]  ;;  %v713_v1 = vld [vmem:[%s692_s23 + $0x8] sm:$0xff]  ;;  %s710_s1 = scalar_lea.vmem %s692_s23, %s3763_s0  ;;  %s3790_s22 = sshll.u32 %s3164_s2, 3 }
  0x19   : > { %v723_v2 = vsel %vm722_vm0, %v712_v0, 0.0  ;;  %v3342_v3 = vld [vmem:[%s710_s1] sm:$0xff]  ;;  %v726_v4 = vsel %vm722_vm0, %v713_v1, 0.0  ;;  %v3072_v21 = vld [vmem:[%s3788_s7 + $0x8] sm:$0xff]   ;;  %v3073_v22 = vld [vmem:[%s3788_s7 + $0x18] sm:$0xff]   ;;  %s3773_s0 = smov 120  }
  0x1a   : > { %724 = vadd.xlane.f32.xlu0 %v723_v2  ;;  %v766_v5 = vsel %vm722_vm0, %v3342_v3, 0.0  ;;  %2845 = vmatpush3.bf16.msra.mxu0 %v3072_v21  ;;  %v3074_v24 = vld [vmem:[%s3788_s7] sm:$0xff]   ;;  %v3075_v25 = vld [vmem:[%s3788_s7 + $0x10] sm:$0xff]   ;;  %s714_s28 = scalar_lea.vmem %s3791_s29, %s3790_s22  ;;  %v717_v48 = vld [vmem:[%s3791_s29 + $0x8] sm:$0xff]  ;;  %s3766_s30 = smov 24  }
  0x1b   : > { %767 = vadd.xlane.f32.xlu1 %v766_v5  ;;  %2853 = vmatpush3.bf16.msra.mxu1 %v3073_v22  ;;  %v716_v47 = vld [vmem:[%s3791_s29] sm:$0xff]  ;;  %v3076_v56 = vld [vmem:[%s3788_s7 + $0x28] sm:$0xff]   ;;  %s2674_s22 = sshll.u32 %s3813_s25, 3  ;;  %s3796_s23 = smov 104  }
  0x1c   : > { %2846 = vmatprep.subr.bf16.mxu0 %v3182_v23  ;;  %2854 = vmatprep.subr.bf16.mxu1 %v3182_v23  ;;  %v3390_v49 = vld [vmem:[%s714_s28] sm:$0xff]  ;;  %s3767_s28 = smov 16   ;;  %s3798_s24 = sld [smem:[#allocation11_spill]] }
  0x1d   : > { %v2678_v36 = vld [vmem:[%s3789_s4] ss:$0 sm:$0xff]  ;;  %p702_p6 = scmp.lt.s32.totalorder %s3164_s2, 1 }
  0x1e   : > { %727 = vadd.xlane.f32.xlu0 %v726_v4  ;;  %2847 = vmatpush3.bf16.msra.mxu0 %v3074_v24  ;;  %v3077_v58 = vld [vmem:[%s3788_s7 + $0x20] sm:$0xff]  }
  0x1f   : > { %2855 = vmatpush3.bf16.msra.mxu1 %v3075_v25  ;;  %2860 = vmatprep.subr.bf16.mxu0 %v3182_v23  ;;  %v2680_v60 = vld [vmem:[%s3792_s8] ss:$0 sm:$0xff]  ;;  %s3815_s2 = smov (!%p702_p6, %s3164_s2), 1 }
  0x20   : > { %2868 = vmatprep.subr.bf16.mxu1 %v3182_v23 }
  0xa3   : > { %v725_v6 = vpop.xlane.xlu0 %724 }
  0xa4   : > { %v730_v7 = vmul.f32 0.03125, %v725_v6  ;;  %v768_v8 = vpop.xlane.xlu1 %767 }
  0xa5   : > { %v769_v9 = vmul.f32 0.03125, %v768_v8 }
  0xa6   : > { %v732_v10 = vsub.f32 %v712_v0, %v730_v7  ;;  %v2689_v0 = vld [vmem:[%s3792_s8 + $0x1] ss:$0 sm:$0xff] }
  0xa7   : > { %v728_v11 = vpop.xlane.xlu0 %727  ;;  %v770_v12 = vsub.f32 %v3342_v3, %v769_v9 }
  0xa8   : > { %v731_v13 = vmul.f32 0.03125, %v728_v11  ;;  %v734_v14 = vmul.f32 %v732_v10, %v732_v10 }
  0xa9   : > { %v771_v15 = vmul.f32 %v770_v12, %v770_v12 }
  0xaa   : > { %v733_v16 = vsub.f32 %v713_v1, %v731_v13  ;;  %v736_v17 = vsel %vm722_vm0, %v734_v14, 0.0 }
  0xab   : > { %737 = vadd.xlane.f32.xlu1 %v736_v17  ;;  %v772_v19 = vsel %vm722_vm0, %v771_v15, 0.0  ;;  %v2698_v15 = vld [vmem:[%s3792_s8 + $0x2] ss:$0 sm:$0xff]  ;;  %s3794_s8 = sld [smem:[#allocation10_spill]] }
  0xac   : > { %v735_v18 = vmul.f32 %v733_v16, %v733_v16 }
  0xae   : > { %v739_v20 = vsel %vm722_vm0, %v735_v18, 0.0 }
  0xaf   : > { %740 = vadd.xlane.f32.xlu0 %v739_v20  ;;  %773 = vadd.xlane.f32.xlu1 %v772_v19 }
 0x134   : > { %v738_v26 = vpop.xlane.xlu1 %737 }
 0x135   : > { %v742_v27 = vmul.f32 0.03125, %v738_v26 }
 0x137   : > { %v744_v28 = vadd.f32 1e-05, %v742_v27 }
 0x138   : > { %v741_v29 = vpop.xlane.xlu0 %740  ;;  %v774_v30 = vpop.xlane.xlu1 %773 }
 0x139   : > { %3094 = vrsqrt.f32 %v744_v28  ;;  %v743_v31 = vmul.f32 0.03125, %v741_v29  ;;  %v775_v32 = vmul.f32 0.03125, %v774_v30 }
 0x13b   : > { %v745_v33 = vadd.f32 1e-05, %v743_v31  ;;  %v776_v34 = vadd.f32 1e-05, %v775_v32 }
 0x13d   : > { %3096 = vrsqrt.f32 %v745_v33 }
 0x13e   : > { %3098 = vrsqrt.f32 %v776_v34 }
 0x146   : > { %v3095_v35 = vpop.eup %3094 }
 0x147   : > { %v748_v37 = vmul.f32 %v3095_v35, %v732_v10 }
 0x149   : > { %v756_v38 = vmul.f32 %v2678_v36, %v748_v37 }
 0x14a   : > { %v3097_v39 = vpop.eup %3096 }
 0x14b   : > { %v3099_v41 = vpop.eup %3098  ;;  %v749_v42 = vmul.f32 %v3097_v39, %v733_v16  ;;  %v764_v45 = vadd.f32 %v2679_v40, %v756_v38 }
 0x14c   : > { %v778_v43 = vmul.f32 %v3099_v41, %v770_v12 }
 0x14d   : > { %v757_v44 = vmul.f32 %v2678_v36, %v749_v42  ;;  %v782_v52 = vadd.f32 %v764_v45, %v716_v47 }
 0x14e   : > { %v779_v46 = vmul.f32 %v2678_v36, %v778_v43 }
 0x14f   : > { %v765_v50 = vadd.f32 %v2679_v40, %v757_v44 }
 0x150   : > { %v780_v51 = vadd.f32 %v2679_v40, %v779_v46 }
 0x151   : > { %v783_v53 = vadd.f32 %v765_v50, %v717_v48  ;;  %v921_v59 = vpack.c.bf16 %v765_v50, %v764_v45 }
 0x152   : > { %v781_v54 = vadd.f32 %v780_v51, %v3390_v49 }
 0x153   : > { %v851_v55 = vpack.c.bf16 %v783_v53, %v782_v52 }
 0x154   : > { %v784_v57 = vpack.c.bf16 %v781_v54, %v781_v54 }
 0x155   : > { %2857 = vmatmul.mubr.msk.bf16.vlgmr.msra.gmra.mxu1 %vm722_vm0, %v851_v55 }
 0x156   : > { %2849 = vmatmul.mubr.msk.bf16.vlgmr.msra.gmra.mxu0 %vm722_vm0, %v784_v57  ;;  %2870 = vmatprep.mubr.msk.bf16.mxu1 %vm3183_vm1, %v3182_v23 }
 0x157   : > { %2861 = vmatpush3.bf16.msra.mxu0 %v3076_v56  ;;  %2864 = vmatprep.mubr.msk.bf16.mxu0 %vm3183_vm1, %v3182_v23 }
 0x158   : > { %2862 = vmatprep.subr.bf16.mxu0 %v3182_v23 }
 0x15b   : > { %2863 = vmatpush3.bf16.msra.mxu0 %v3077_v58 }
 0x15c   : > { %2874 = vmatprep.subr.bf16.mxu0 %v3182_v23 }
 0x15e   : > { %2865 = vmatmul.mubr.msk.bf16.vlgmr.msra.gmra.mxu0 %vm722_vm0, %v921_v59 }
 0x15f   : > { %2876 = vmatprep.mubr.msk.bf16.mxu0 %vm3183_vm1, %v3182_v23 }
 0x215   : > { %v914_v61 = vpop.f32.mrf.mxu1 }
 0x216   : > { %v845_v62 = vpop.f32.mrf.mxu0  ;;  %v915_v6 = vadd.f32 %v2689_v0, %v914_v61 }
 0x217   : > { %v846_v63 = vadd.f32 %v2680_v60, %v845_v62  ;;  %v2858_v1 = vpop.f32.mrf.mxu1 }
 0x218   : > { %v2850_v2 = vpop.f32.mrf.mxu0 }
 0x219   : > { %v991_v4 = vmul.f32 0.35355338, %v846_v63  ;;  %v917_v5 = vpop.f32.mrf.mxu1 }
 0x21a   : > { %v848_v7 = vpop.f32.mrf.mxu0  ;;  %v918_v8 = vadd.f32 %v2689_v0, %v917_v5 }
 0x21b   : > { %v992_v9 = vpack.c.bf16 %v991_v4, %v991_v4  ;;  %v2859_v10 = vpop.f32.mrf.mxu1 }
 0x21c   : > { %v993_v11 = vpack.c.bf16 %v918_v8, %v915_v6  ;;  %v2851_v12 = vpop.f32.mrf.mxu0 }
 0x21d   : > { %1100 = vrot.lane.b32.xlu1 %v992_v9, %s3773_s0 }
 0x21e   : > { %v984_v13 = vpop.f32.mrf.mxu0  ;;  %1103 = vrot.lane.b32.xlu0 %v993_v11, %s3773_s0  ;;  %v1000_v14 = vsel %vm995_vm2, %v993_v11, 0 }
 0x21f   : > { %2869 = vmatpush3.bf16.xpose.msra.mxu1 %v1000_v14  ;;  %v985_v18 = vadd.f32 %v2698_v15, %v984_v13 }
 0x220   : > { %v2866_v16 = vpop.f32.mrf.mxu0  ;;  %2880 = vmatprep.subr.bf16.mxu1 %v3182_v23 }
 0x221   : > { %1218 = vrot.lane.b32.xlu1 %v993_v11, %s3769_s5 }
 0x222   : > { %v987_v17 = vpop.f32.mrf.mxu0  ;;  %1332 = vrot.lane.b32.xlu0 %v993_v11, %s3771_s26 }
 0x223   : > { %v988_v19 = vadd.f32 %v2698_v15, %v987_v17 }
 0x224   : > { %v2867_v20 = vpop.f32.mrf.mxu0 }
 0x225   : > { %v3425_v21 = vpack.c.bf16 %v988_v19, %v985_v18  ;;  %1216 = vrot.lane.b32.xlu1 %v992_v9, %s3769_s5 }
 0x226   : > { %2871 = vmatmul.mubr.msk.bf16.vlgmr.msra.gmra.mxu1 %vm995_vm2, %v992_v9 }
 0x227   : > { %2875 = vmatpush3.bf16.msra.mxu0 %v3425_v21  ;;  %2882 = vmatprep.mubr.msk.bf16.mxu1 %vm3183_vm1, %v3182_v23 }
 0x228   : > { %2886 = vmatprep.subr.bf16.mxu0 %v3182_v23 }
 0x229   : > { %1330 = vrot.lane.b32.xlu1 %v992_v9, %s3771_s26 }
 0x28f   : > { %v1101_v22 = vpop.permute.xlu1 %1100 }
 0x290   : > { %v1104_v24 = vpop.permute.xlu0 %1103 }
 0x291   : > { %v1109_v25 = vsel %vm995_vm2, %v1104_v24, 0 }
 0x292   : > { %2881 = vmatpush3.bf16.xpose.msra.mxu1 %v1109_v25 }
 0x293   : > { %2892 = vmatprep.subr.bf16.mxu1 %v3182_v23  ;;  %v1219_v26 = vpop.permute.xlu1 %1218 }
 0x294   : > { %v1224_v27 = vsel %vm995_vm2, %v1219_v26, 0  ;;  %v1333_v28 = vpop.permute.xlu0 %1332 }
 0x295   : > { %v1338_v30 = vsel %vm995_vm2, %v1333_v28, 0 }
 0x297   : > { %v1217_v29 = vpop.permute.xlu1 %1216 }
 0x299   : > { %2883 = vmatmul.mubr.msk.bf16.vlgmr.msra.gmra.mxu1 %vm995_vm2, %v1101_v22 }
 0x29a   : > { %2893 = vmatpush3.bf16.xpose.msra.mxu1 %v1224_v27  ;;  %2894 = vmatprep.mubr.msk.bf16.mxu1 %vm3183_vm1, %v3182_v23 }
 0x29b   : > { %2904 = vmatprep.subr.bf16.mxu1 %v3182_v23  ;;  %v1331_v31 = vpop.permute.xlu1 %1330 }
 0x2a1   : > { %2895 = vmatmul.mubr.msk.bf16.vlgmr.msra.gmra.mxu1 %vm995_vm2, %v1217_v29 }
 0x2a2   : > { %2905 = vmatpush3.bf16.xpose.msra.mxu1 %v1338_v30  ;;  %2906 = vmatprep.mubr.msk.bf16.mxu1 %vm3183_vm1, %v3182_v23 }
 0x2a3   : > { %2916 = vmatprep.subr.bf16.mxu1 %v3182_v23 }
 0x2a9   : > { %2907 = vmatmul.mubr.msk.bf16.vlgmr.msra.gmra.mxu1 %vm995_vm2, %v1331_v31 }
 0x2aa   : > { %2920 = vmatprep.mubr.msk.bf16.mxu1 %vm3183_vm1, %v3182_v23 }
 0x2e6   : > { %v1036_v32 = vpop.f32.mrf.mxu1 }
 0x2e7   : > { %v1043_v33 = vsel %vm1042_vm3, %v1036_v32, -inf }
 0x2e8   : > { %1044 = vmax.xlane.f32.xlu0 %v1043_v33  ;;  %v2872_v34 = vpop.f32.mrf.mxu1 }
 0x2ea   : > { %v1039_v35 = vpop.f32.mrf.mxu1 }
 0x2ec   : > { %v2873_v36 = vpop.f32.mrf.mxu1 }
 0x359   : > { %v1145_v37 = vpop.f32.mrf.mxu1 }
 0x35a   : > { %v1151_v38 = vsel %vm1042_vm3, %v1145_v37, -inf }
 0x35b   : > { %1152 = vmax.xlane.f32.xlu1 %v1151_v38  ;;  %v2884_v39 = vpop.f32.mrf.mxu1 }
 0x35d   : > { %v1148_v40 = vpop.f32.mrf.mxu1 }
 0x35f   : > { %v2885_v41 = vpop.f32.mrf.mxu1 }
 0x361   : > { %v1260_v42 = vpop.f32.mrf.mxu1 }
 0x362   : > { %v1266_v43 = vsel %vm1042_vm3, %v1260_v42, -inf }
 0x363   : > { %1267 = vmax.xlane.f32.xlu0 %v1266_v43  ;;  %v2896_v44 = vpop.f32.mrf.mxu1  ;;  %v3079_v43 = vld [vmem:[%s3748_s9] sm:$0xff]  }
 0x365   : > { %v1263_v45 = vpop.f32.mrf.mxu1 }
 0x367   : > { %v2897_v46 = vpop.f32.mrf.mxu1 }
 0x369   : > { %v1374_v47 = vpop.f32.mrf.mxu1 }
 0x36a   : > { %v1380_v48 = vsel %vm1042_vm3, %v1374_v47, -inf }
 0x36b   : > { %1381 = vmax.xlane.f32.xlu0 %v1380_v48  ;;  %v2908_v50 = vpop.f32.mrf.mxu1 }
 0x36d   : > { %v1377_v51 = vpop.f32.mrf.mxu1 }
 0x36f   : > { %v2909_v52 = vpop.f32.mrf.mxu1 }
 0x371   : > { %v1045_v53 = vpop.xlane.xlu0 %1044 }
 0x372   : > { %v1046_v54 = vsub.f32 %v1036_v32, %v1045_v53 }
 0x374   : > { %v1047_v55 = vmul.f32 1.442695, %v1046_v54  ;;  %v2710_v54 = vld [vmem:[%s3749_s10] ss:$0 sm:$0xff] }
 0x376   : > { %3100 = vpow2.f32 %v1047_v55 }
 0x383   : > { %v3101_v56 = vpop.eup %3100 }
 0x384   : > { %v1049_v57 = vsel %vm1042_vm3, %v3101_v56, 0.0 }
 0x385   : > { %1050 = vadd.xlane.f32.xlu0 %v1049_v57 }
 0x3e4   : > { %v1153_v58 = vpop.xlane.xlu1 %1152 }
 0x3e5   : > { %v1154_v59 = vsub.f32 %v1145_v37, %v1153_v58 }
 0x3e7   : > { %v1155_v60 = vmul.f32 1.442695, %v1154_v59 }
 0x3e9   : > { %3102 = vpow2.f32 %v1155_v60 }
 0x3ec   : > { %v1268_v61 = vpop.xlane.xlu0 %1267 }
 0x3ed   : > { %v1269_v62 = vsub.f32 %v1260_v42, %v1268_v61  ;;  %v3078_v42 = vld [vmem:[%s3748_s9 + $0x8] sm:$0xff]  }
 0x3ee   : > { %2917 = vmatpush3.bf16.msra.mxu1 %v3078_v42 }
 0x3ef   : > { %v1270_v63 = vmul.f32 1.442695, %v1269_v62  ;;  %2918 = vmatprep.subr.bf16.mxu1 %v3182_v23 }
 0x3f1   : > { %3104 = vpow2.f32 %v1270_v63 }
 0x3f2   : > { %2919 = vmatpush3.bf16.msra.mxu1 %v3079_v43 }
 0x3f3   : > { %2932 = vmatprep.subr.bf16.mxu1 %v3182_v23 }
 0x3f4   : > { %v1382_v5 = vpop.xlane.xlu0 %1381 }
 0x3f5   : > { %v1383_v7 = vsub.f32 %v1374_v47, %v1382_v5 }
 0x3f6   : > { %v3103_v0 = vpop.eup %3102 }
 0x3f7   : > { %v1157_v1 = vsel %vm1042_vm3, %v3103_v0, 0.0  ;;  %v1384_v8 = vmul.f32 1.442695, %v1383_v7  ;;  %v2716_v7 = vld [vmem:[%s3789_s4 + $0x3] ss:$0 sm:$0xff] }
 0x3f8   : > { %1158 = vadd.xlane.f32.xlu1 %v1157_v1 }
 0x3fe   : > { %v3105_v2 = vpop.eup %3104 }
 0x3ff   : > { %v1272_v4 = vsel %vm1042_vm3, %v3105_v2, 0.0 }
 0x400   : > { %1273 = vadd.xlane.f32.xlu0 %v1272_v4 }
 0x409   : > { %1278 = vrot.lane.b32.xlu1 %v3425_v21, %s3769_s5  ;;  %s3797_s5 = smov 112  }
 0x40e   : > { %v1051_v6 = vpop.xlane.xlu0 %1050 }
 0x40f   : > { %3106 = vrcp.f32 %v1051_v6 }
 0x410   : > { %3108 = vpow2.f32 %v1384_v8 }
 0x416   : > { %1164 = vrot.lane.b32.xlu0 %v3425_v21, %s3773_s0 }
 0x41c   : > { %v3107_v9 = vpop.eup %3106 }
 0x41d   : > { %v1053_v10 = vmul.f32 %v3107_v9, %v3101_v56  ;;  %v3109_v12 = vpop.eup %3108  ;;  %v2717_v9 = vld [vmem:[%s3745_s6 + $0x3] ss:$0 sm:$0xff] }
 0x41e   : > { %v1386_v13 = vsel %vm1042_vm3, %v3109_v12, 0.0 }
 0x41f   : > { %v1054_v11 = vpack.c.bf16 %v1053_v10, %v1053_v10 }
 0x421   : > { %2877 = vmatmul.mubr.msk.bf16.vlgmr.msra.gmra.mxu0 %vm1042_vm3, %v1054_v11 }
 0x422   : > { %2888 = vmatprep.mubr.msk.bf16.mxu0 %vm3183_vm1, %v3182_v23 }
 0x42d   : > { %1387 = vadd.xlane.f32.xlu1 %v1386_v13 }
 0x43e   : > { %1392 = vrot.lane.b32.xlu1 %v3425_v21, %s3771_s26  ;;  %s2675_s26 = sshll.u32 %s3813_s25, 1 }
 0x481   : > { %v1159_v14 = vpop.xlane.xlu1 %1158 }
 0x482   : > { %3110 = vrcp.f32 %v1159_v14 }
 0x485   : > { %v1279_v20 = vpop.permute.xlu1 %1278 }
 0x489   : > { %v1274_v15 = vpop.xlane.xlu0 %1273 }
 0x48a   : > { %3112 = vrcp.f32 %v1274_v15 }
 0x48d   : > { %v1165_v16 = vpop.permute.xlu0 %1164 }
 0x48e   : > { %2887 = vmatpush3.bf16.msra.mxu0 %v1165_v16 }
 0x48f   : > { %v3111_v17 = vpop.eup %3110  ;;  %2898 = vmatprep.subr.bf16.mxu0 %v3182_v23 }
 0x490   : > { %v1161_v18 = vmul.f32 %v3111_v17, %v3103_v0 }
 0x492   : > { %v1162_v19 = vpack.c.bf16 %v1161_v18, %v1161_v18 }
 0x494   : > { %2889 = vmatmul.mubr.msk.bf16.vlgmr.msra.gmra.mxu0 %vm1042_vm3, %v1162_v19  ;;  %v3080_v19 = vld [vmem:[%s3750_s11 + $0x18] sm:$0xff]  }
 0x495   : > { %2899 = vmatpush3.bf16.msra.mxu0 %v1279_v20  ;;  %2900 = vmatprep.mubr.msk.bf16.mxu0 %vm3183_vm1, %v3182_v23 }
 0x496   : > { %2910 = vmatprep.subr.bf16.mxu0 %v3182_v23 }
 0x497   : > { %v3113_v21 = vpop.eup %3112 }
 0x498   : > { %v1276_v22 = vmul.f32 %v3113_v21, %v3105_v2  ;;  %v719_v21 = vld [vmem:[%s3794_s8] sm:$0xff] }
 0x49a   : > { %v1277_v24 = vpack.c.bf16 %v1276_v22, %v1276_v22 }
 0x49c   : > { %2901 = vmatmul.mubr.msk.bf16.vlgmr.msra.gmra.mxu0 %vm1042_vm3, %v1277_v24 }
 0x49d   : > { %2912 = vmatprep.mubr.msk.bf16.mxu0 %vm3183_vm1, %v3182_v23 }
 0x4b6   : > { %v1388_v25 = vpop.xlane.xlu1 %1387 }
 0x4b7   : > { %3114 = vrcp.f32 %v1388_v25  ;;  %v3082_v25 = vld [vmem:[%s3750_s11 + $0x8] sm:$0xff]  }
 0x4ba   : > { %v1393_v26 = vpop.permute.xlu1 %1392 }
 0x4bb   : > { %2911 = vmatpush3.bf16.msra.mxu0 %v1393_v26  ;;  %v3083_v26 = vld [vmem:[%s3750_s11] sm:$0xff]  }
 0x4bc   : > { %2924 = vmatprep.subr.bf16.mxu0 %v3182_v23 }
 0x4c4   : > { %v3115_v27 = vpop.eup %3114 }
 0x4c5   : > { %v1390_v28 = vmul.f32 %v3115_v27, %v3109_v12 }
 0x4c7   : > { %v1391_v29 = vpack.c.bf16 %v1390_v28, %v1390_v28 }
 0x4c9   : > { %2913 = vmatmul.mubr.msk.bf16.vlgmr.msra.gmra.mxu0 %vm1042_vm3, %v1391_v29 }
 0x4ca   : > { %2928 = vmatprep.mubr.msk.bf16.mxu0 %vm3183_vm1, %v3182_v23  ;;  %2925 = vmatpush3.bf16.msra.mxu0 %v3082_v25 }
 0x4cb   : > { %2926 = vmatprep.subr.bf16.mxu0 %v3182_v23 }
 0x4ce   : > { %2927 = vmatpush3.bf16.msra.mxu0 %v3083_v26 }
 0x4cf   : > { %2940 = vmatprep.subr.bf16.mxu0 %v3182_v23 }
 0x4e1   : > { %v1092_v30 = vpop.f32.mrf.mxu0 }
 0x4e2   : > { %1098 = vst.msk [vmem:[#allocation2] sm:$0xff] %vm995_vm2, %v1092_v30 }
 0x4e3   : > { %v2878_v31 = vpop.f32.mrf.mxu0 }
 0x4e4   : > { %v2720_v31 = vld [vmem:[%s3789_s4 + $0x1] ss:$0 sm:$0xff] }
 0x4e5   : > { %v1095_v32 = vpop.f32.mrf.mxu0 }
 0x4e7   : > { %v2879_v33 = vpop.f32.mrf.mxu0 }
 0x4e8   : > { %v2721_v33 = vld [vmem:[%s3745_s6 + $0x1] ss:$0 sm:$0xff] }
 0x554   : > { %v1204_v34 = vpop.f32.mrf.mxu0 }
 0x555   : > { %1211 = vrot.lane.b32.xlu1 %v1204_v34, %s3768_s27 }
 0x556   : > { %v2890_v35 = vpop.f32.mrf.mxu0 }
 0x558   : > { %v1207_v36 = vpop.f32.mrf.mxu0 }
 0x55a   : > { %v2891_v37 = vpop.f32.mrf.mxu0 }
 0x55c   : > { %v1318_v38 = vpop.f32.mrf.mxu0 }
 0x55d   : > { %1325 = vrot.lane.b32.xlu0 %v1318_v38, %s3767_s28  ;;  %s3793_s28 = sld [smem:[#allocation9_spill]]  ;;  %v2731_v38 = vld [vmem:[%s3751_s12 + $0x1] ss:$0 sm:$0xff] }
 0x55e   : > { %v2902_v39 = vpop.f32.mrf.mxu0 }
 0x560   : > { %v1321_v40 = vpop.f32.mrf.mxu0 }
 0x562   : > { %v2903_v41 = vpop.f32.mrf.mxu0 }
 0x563   : > { %s696_s27 = scalar_lea.vmem %s3793_s28, %s2674_s22  ;;  %s3795_s22 = smov 120  }
 0x564   : > { %v3525_v20 = vld [vmem:[%s696_s27] sm:$0xff]  ;;  %s3801_s27 = smov 24  }
 0x565   : > { %v1576_v22 = vadd.f32 %v719_v21, %v3525_v20 }
 0x567   : > { %v1645_v24 = vpack.c.bf16 %v1576_v22, %v1576_v22 }
 0x589   : > { %v1432_v44 = vpop.f32.mrf.mxu0 }
 0x58a   : > { %1439 = vrot.lane.b32.xlu1 %v1432_v44, %s3766_s30  ;;  %s699_s30 = scalar_lea.vmem %s3798_s24, %s3813_s25 }
 0x58b   : > { %v2914_v45 = vpop.f32.mrf.mxu0 }
 0x58c   : > { %v2722_v45 = vld [vmem:[%s3751_s12] ss:$0 sm:$0xff] }
 0x58d   : > { %v1435_v46 = vpop.f32.mrf.mxu0 }
 0x58f   : > { %v2915_v47 = vpop.f32.mrf.mxu0 }
 0x5c7   : > { %v1212_v48 = vpop.permute.xlu1 %1211 }
 0x5c8   : > { %1215 = vst.msk [vmem:[#allocation2] sm:$0xff] %vm1214_vm4, %v1212_v48 }
 0x5cf   : > { %v1326_v50 = vpop.permute.xlu0 %1325 }
 0x5d0   : > { %1329 = vst.msk [vmem:[#allocation2] sm:$0xff] %vm1328_vm5, %v1326_v50 }
 0x5fc   : > { %v1440_v51 = vpop.permute.xlu1 %1439 }
 0x5fd   : > { %1443 = vst.msk [vmem:[#allocation2] sm:$0xff] %vm1442_vm6, %v1440_v51 }
 0x604   : > { %v1444_v52 = vld [vmem:[#allocation2] sm:$0xff] }
 0x605   : > { %v1445_v53 = vpack.c.bf16 %v1444_v52, %v1444_v52 }
 0x607   : > { %2921 = vmatmul.mubr.msk.bf16.vlgmr.msra.gmra.mxu1 %vm722_vm0, %v1445_v53 }
 0x608   : > { %2936 = vmatprep.mubr.msk.bf16.mxu1 %vm3183_vm1, %v3182_v23  ;;  %2933 = vmatpush3.bf16.msra.mxu1 %v3080_v19 }
 0x609   : > { %2934 = vmatprep.subr.bf16.mxu1 %v3182_v23 }
 0x6c7   : > { %v1506_v55 = vpop.f32.mrf.mxu1 }
 0x6c8   : > { %v1507_v56 = vadd.f32 %v2710_v54, %v1506_v55 }
 0x6c9   : > { %v2922_v57 = vpop.f32.mrf.mxu1 }
 0x6ca   : > { %v1516_v58 = vsel %vm722_vm0, %v1507_v56, 0.0  ;;  %v3085_v57 = vld [vmem:[%s3750_s11 + $0x20] sm:$0xff]  }
 0x6cb   : > { %1517 = vadd.xlane.f32.xlu0 %v1516_v58  ;;  %v1509_v59 = vpop.f32.mrf.mxu1  ;;  %v1714_v58 = vpack.c.bf16 %v3525_v20, %v3525_v20 }
 0x6cd   : > { %v2923_v60 = vpop.f32.mrf.mxu1 }
 0x754   : > { %v1518_v61 = vpop.xlane.xlu0 %1517 }
 0x755   : > { %v1519_v62 = vmul.f32 0.03125, %v1518_v61 }
 0x757   : > { %v1520_v63 = vsub.f32 %v1507_v56, %v1519_v62  ;;  %v3084_v56 = vld [vmem:[%s3750_s11 + $0x28] sm:$0xff]  }
 0x759   : > { %v1521_v0 = vmul.f32 %v1520_v63, %v1520_v63 }
 0x75b   : > { %v1522_v1 = vsel %vm722_vm0, %v1521_v0, 0.0 }
 0x75c   : > { %1523 = vadd.xlane.f32.xlu1 %v1522_v1 }
 0x7e5   : > { %v1524_v2 = vpop.xlane.xlu1 %1523 }
 0x7e6   : > { %v1525_v4 = vmul.f32 0.03125, %v1524_v2  ;;  %v2744_v2 = vld [vmem:[%s699_s30] ss:$0 sm:$0xff] }
 0x7e8   : > { %v1526_v5 = vadd.f32 1e-05, %v1525_v4 }
 0x7ea   : > { %3116 = vrsqrt.f32 %v1526_v5 }
 0x7f7   : > { %v3117_v6 = vpop.eup %3116 }
 0x7f8   : > { %v1528_v8 = vmul.f32 %v3117_v6, %v1520_v63 }
 0x7fa   : > { %v1535_v10 = vmul.f32 %v2716_v7, %v1528_v8 }
 0x7fc   : > { %v1542_v11 = vadd.f32 %v2717_v9, %v1535_v10 }
 0x7fe   : > { %v3508_v12 = vadd.f32 %v1542_v11, %v3342_v3  ;;  %v3081_v3 = vld [vmem:[%s3750_s11 + $0x10] sm:$0xff]  }
 0x7ff   : > { %2935 = vmatpush3.bf16.msra.mxu1 %v3081_v3 }
 0x800   : > { %v1548_v13 = vsel %vm722_vm0, %v3508_v12, 0.0  ;;  %2948 = vmatprep.subr.bf16.mxu1 %v3182_v23 }
 0x801   : > { %1549 = vadd.xlane.f32.xlu0 %v1548_v13 }
 0x802   : > { %2937 = vmatmul.mubr.msk.bf16.vlgmr.msra.gmra.mxu1 %vm722_vm0, %v1645_v24 }
 0x803   : > { %2950 = vmatprep.mubr.msk.bf16.mxu1 %vm3183_vm1, %v3182_v23 }
 0x88a   : > { %v1550_v14 = vpop.xlane.xlu0 %1549 }
 0x88b   : > { %v1551_v15 = vmul.f32 0.03125, %v1550_v14 }
 0x88d   : > { %v1552_v16 = vsub.f32 %v3508_v12, %v1551_v15 }
 0x88f   : > { %v1553_v17 = vmul.f32 %v1552_v16, %v1552_v16 }
 0x891   : > { %v1554_v18 = vsel %vm722_vm0, %v1553_v17, 0.0 }
 0x892   : > { %1555 = vadd.xlane.f32.xlu0 %v1554_v18 }
 0x8c2   : > { %v1708_v39 = vpop.f32.mrf.mxu1 }
 0x8c3   : > { %v1709_v40 = vadd.f32 %v2731_v38, %v1708_v39 }
 0x8c4   : > { %v2938_v41 = vpop.f32.mrf.mxu1 }
 0x8c5   : > { %v1785_v42 = vpack.c.bf16 %v1709_v40, %v1709_v40 }
 0x8c6   : > { %v1711_v43 = vpop.f32.mrf.mxu1 }
 0x8c7   : > { %1903 = vrot.lane.b32.xlu0 %v1785_v42, %s3795_s22 }
 0x8c8   : > { %v2939_v44 = vpop.f32.mrf.mxu1 }
 0x8cb   : > { %2134 = vrot.lane.b32.xlu0 %v1785_v42, %s3796_s23 }
 0x91b   : > { %v1556_v27 = vpop.xlane.xlu0 %1555 }
 0x91c   : > { %v1557_v28 = vmul.f32 0.03125, %v1556_v27 }
 0x91e   : > { %v1558_v29 = vadd.f32 1e-05, %v1557_v28 }
 0x920   : > { %3118 = vrsqrt.f32 %v1558_v29 }
 0x92d   : > { %v3119_v30 = vpop.eup %3118 }
 0x92e   : > { %v1560_v32 = vmul.f32 %v3119_v30, %v1552_v16 }
 0x930   : > { %v1567_v34 = vmul.f32 %v2720_v31, %v1560_v32 }
 0x932   : > { %v1574_v35 = vadd.f32 %v2721_v33, %v1567_v34  ;;  %v2740_v33 = vld [vmem:[%s3751_s12 + $0x2] ss:$0 sm:$0xff] }
 0x934   : > { %v1575_v36 = vadd.f32 %v1574_v35, %v3390_v49  ;;  %v1797_v49 = vsel %vm995_vm2, %v1785_v42, 0 }
 0x935   : > { %2949 = vmatpush3.bf16.xpose.msra.mxu1 %v1797_v49 }
 0x936   : > { %v1578_v37 = vpack.c.bf16 %v1575_v36, %v1575_v36  ;;  %2960 = vmatprep.subr.bf16.mxu1 %v3182_v23 }
 0x938   : > { %2929 = vmatmul.mubr.msk.bf16.vlgmr.msra.gmra.mxu0 %vm722_vm0, %v1578_v37 }
 0x939   : > { %2944 = vmatprep.mubr.msk.bf16.mxu0 %vm3183_vm1, %v3182_v23  ;;  %v1904_v52 = vpop.permute.xlu0 %1903  ;;  %2941 = vmatpush3.bf16.msra.mxu0 %v3084_v56 }
 0x93a   : > { %v1909_v54 = vsel %vm995_vm2, %v1904_v52, 0  ;;  %2942 = vmatprep.subr.bf16.mxu0 %v3182_v23 }
 0x93d   : > { %2943 = vmatpush3.bf16.msra.mxu0 %v3085_v57  ;;  %v2135_v62 = vpop.permute.xlu0 %2134 }
 0x93e   : > { %2954 = vmatprep.subr.bf16.mxu0 %v3182_v23  ;;  %v2140_v0 = vsel %vm995_vm2, %v2135_v62, 0 }
 0x940   : > { %2945 = vmatmul.mubr.msk.bf16.vlgmr.msra.gmra.mxu0 %vm722_vm0, %v1714_v58 }
 0x941   : > { %2956 = vmatprep.mubr.msk.bf16.mxu0 %vm3183_vm1, %v3182_v23 }
 0x9f8   : > { %v1639_v46 = vpop.f32.mrf.mxu0 }
 0x9f9   : > { %v1640_v47 = vadd.f32 %v2722_v45, %v1639_v46 }
 0x9fa   : > { %v2930_v48 = vpop.f32.mrf.mxu0 }
 0x9fb   : > { %v1783_v50 = vmul.f32 0.35355338, %v1640_v47 }
 0x9fc   : > { %v1642_v51 = vpop.f32.mrf.mxu0 }
 0x9fd   : > { %v1784_v53 = vpack.c.bf16 %v1783_v50, %v1783_v50 }
 0x9fe   : > { %v2931_v55 = vpop.f32.mrf.mxu0 }
 0x9ff   : > { %1900 = vrot.lane.b32.xlu1 %v1784_v53, %s3795_s22  ;;  %2951 = vmatmul.mubr.msk.bf16.vlgmr.msra.gmra.mxu1 %vm995_vm2, %v1784_v53 }
 0xa00   : > { %2961 = vmatpush3.bf16.xpose.msra.mxu1 %v1909_v54  ;;  %2962 = vmatprep.mubr.msk.bf16.mxu1 %vm3183_vm1, %v3182_v23  ;;  %v1777_v32 = vpop.f32.mrf.mxu0 }
 0xa01   : > { %2972 = vmatprep.subr.bf16.mxu1 %v3182_v23  ;;  %v1778_v36 = vadd.f32 %v2740_v33, %v1777_v32 }
 0xa02   : > { %v2946_v34 = vpop.f32.mrf.mxu0 }
 0xa03   : > { %2019 = vrot.lane.b32.xlu1 %v1785_v42, %s3797_s5  ;;  %v1786_v40 = vpack.c.bf16 %v1778_v36, %v1778_v36 }
 0xa04   : > { %v1780_v35 = vpop.f32.mrf.mxu0 }
 0xa05   : > { %v1856_v41 = vsel %vm1854_vm7, %v1786_v40, 0 }
 0xa06   : > { %v2947_v38 = vpop.f32.mrf.mxu0  ;;  %2955 = vmatpush3.bf16.msra.mxu0 %v1856_v41 }
 0xa07   : > { %2017 = vrot.lane.b32.xlu1 %v1784_v53, %s3797_s5  ;;  %2966 = vmatprep.subr.bf16.mxu0 %v3182_v23 }
 0xa0b   : > { %2132 = vrot.lane.b32.xlu1 %v1784_v53, %s3796_s23 }
 0xa71   : > { %v1901_v59 = vpop.permute.xlu1 %1900 }
 0xa72   : > { %2963 = vmatmul.mubr.msk.bf16.vlgmr.msra.gmra.mxu1 %vm995_vm2, %v1901_v59 }
 0xa73   : > { %2974 = vmatprep.mubr.msk.bf16.mxu1 %vm3183_vm1, %v3182_v23 }
 0xa75   : > { %v2020_v60 = vpop.permute.xlu1 %2019 }
 0xa76   : > { %v2025_v61 = vsel %vm995_vm2, %v2020_v60, 0 }
 0xa77   : > { %2973 = vmatpush3.bf16.xpose.msra.mxu1 %v2025_v61 }
 0xa78   : > { %2984 = vmatprep.subr.bf16.mxu1 %v3182_v23 }
 0xa79   : > { %v2018_v63 = vpop.permute.xlu1 %2017 }
 0xa7d   : > { %v2133_v1 = vpop.permute.xlu1 %2132 }
 0xa7e   : > { %2975 = vmatmul.mubr.msk.bf16.vlgmr.msra.gmra.mxu1 %vm995_vm2, %v2018_v63 }
 0xa7f   : > { %2985 = vmatpush3.bf16.xpose.msra.mxu1 %v2140_v0  ;;  %2986 = vmatprep.mubr.msk.bf16.mxu1 %vm3183_vm1, %v3182_v23 }
 0xa80   : > { %2996 = vmatprep.subr.bf16.mxu1 %v3182_v23 }
 0xa86   : > { %2987 = vmatmul.mubr.msk.bf16.vlgmr.msra.gmra.mxu1 %vm995_vm2, %v2133_v1 }
 0xa87   : > { %3000 = vmatprep.mubr.msk.bf16.mxu1 %vm3183_vm1, %v3182_v23 }
 0xabf   : > { %v1833_v4 = vpop.f32.mrf.mxu1 }
 0xac0   : > { %v1834_v5 = vadd.f32 %v2744_v2, %v1833_v4 }
 0xac1   : > { %v2952_v6 = vpop.f32.mrf.mxu1 }
 0xac2   : > { %v1839_v7 = vsel %vm995_vm2, %v1834_v5, -inf }
 0xac3   : > { %1840 = vmax.xlane.f32.xlu0 %v1839_v7  ;;  %v1836_v8 = vpop.f32.mrf.mxu1 }
 0xac5   : > { %v2953_v9 = vpop.f32.mrf.mxu1 }
 0xb32   : > { %v1945_v10 = vpop.f32.mrf.mxu1 }
 0xb33   : > { %v1946_v11 = vadd.f32 %v2744_v2, %v1945_v10 }
 0xb34   : > { %v2964_v13 = vpop.f32.mrf.mxu1 }
 0xb35   : > { %v1951_v14 = vsel %vm995_vm2, %v1946_v11, -inf }
 0xb36   : > { %1952 = vmax.xlane.f32.xlu1 %v1951_v14  ;;  %v1948_v15 = vpop.f32.mrf.mxu1 }
 0xb38   : > { %v2965_v16 = vpop.f32.mrf.mxu1 }
 0xb3e   : > { %v2061_v17 = vpop.f32.mrf.mxu1 }
 0xb3f   : > { %v2062_v18 = vadd.f32 %v2744_v2, %v2061_v17 }
 0xb40   : > { %v2976_v19 = vpop.f32.mrf.mxu1 }
 0xb41   : > { %v2067_v3 = vsel %vm995_vm2, %v2062_v18, -inf }
 0xb42   : > { %2068 = vmax.xlane.f32.xlu0 %v2067_v3  ;;  %v2064_v20 = vpop.f32.mrf.mxu1 }
 0xb44   : > { %v2977_v21 = vpop.f32.mrf.mxu1 }
 0xb46   : > { %v2176_v22 = vpop.f32.mrf.mxu1 }
 0xb47   : > { %v2177_v24 = vadd.f32 %v2744_v2, %v2176_v22 }
 0xb48   : > { %v2988_v25 = vpop.f32.mrf.mxu1 }
 0xb49   : > { %v2182_v26 = vsel %vm995_vm2, %v2177_v24, -inf }
 0xb4a   : > { %2183 = vmax.xlane.f32.xlu0 %v2182_v26  ;;  %v2179_v27 = vpop.f32.mrf.mxu1 }
 0xb4c   : > { %v1841_v28 = vpop.xlane.xlu0 %1840  ;;  %v2989_v29 = vpop.f32.mrf.mxu1 }
 0xb4d   : > { %v1842_v30 = vsub.f32 %v1834_v5, %v1841_v28  ;;  %v3086_v29 = vld [vmem:[%s3752_s13 + $0x8] sm:$0xff]  }
 0xb4e   : > { %2997 = vmatpush3.bf16.msra.mxu1 %v3086_v29 }
 0xb4f   : > { %v1843_v31 = vmul.f32 1.442695, %v1842_v30  ;;  %v3087_v30 = vld [vmem:[%s3752_s13] sm:$0xff]   ;;  %2998 = vmatprep.subr.bf16.mxu1 %v3182_v23 }
 0xb51   : > { %3120 = vpow2.f32 %v1843_v31 }
 0xb52   : > { %2999 = vmatpush3.bf16.msra.mxu1 %v3087_v30  ;;  %v3090_v30 = vld [vmem:[%s3758_s19 + $0x18] sm:$0xff]  }
 0xb53   : > { %3012 = vmatprep.subr.bf16.mxu1 %v3182_v23 }
 0xb5e   : > { %v3121_v37 = vpop.eup %3120 }
 0xb5f   : > { %v1845_v39 = vsel %vm995_vm2, %v3121_v37, 0.0 }
 0xb60   : > { %1846 = vadd.xlane.f32.xlu0 %v1845_v39 }
 0xbbf   : > { %v1953_v42 = vpop.xlane.xlu1 %1952 }
 0xbc0   : > { %v1954_v43 = vsub.f32 %v1946_v11, %v1953_v42 }
 0xbc2   : > { %v1955_v44 = vmul.f32 1.442695, %v1954_v43 }
 0xbc4   : > { %3122 = vpow2.f32 %v1955_v44 }
 0xbcb   : > { %v2069_v49 = vpop.xlane.xlu0 %2068 }
 0xbcc   : > { %v2070_v45 = vsub.f32 %v2062_v18, %v2069_v49 }
 0xbce   : > { %v2071_v46 = vmul.f32 1.442695, %v2070_v45 }
 0xbd0   : > { %3124 = vpow2.f32 %v2071_v46 }
 0xbd1   : > { %v3123_v47 = vpop.eup %3122 }
 0xbd2   : > { %v1957_v48 = vsel %vm995_vm2, %v3123_v47, 0.0 }
 0xbd3   : > { %1958 = vadd.xlane.f32.xlu1 %v1957_v48  ;;  %v2184_v52 = vpop.xlane.xlu0 %2183 }
 0xbd4   : > { %v2185_v54 = vsub.f32 %v2177_v24, %v2184_v52 }
 0xbd6   : > { %v2186_v55 = vmul.f32 1.442695, %v2185_v54 }
 0xbdd   : > { %v3125_v50 = vpop.eup %3124 }
 0xbde   : > { %v2073_v51 = vsel %vm995_vm2, %v3125_v50, 0.0 }
 0xbdf   : > { %2074 = vadd.xlane.f32.xlu0 %v2073_v51 }
 0xbe4   : > { %2079 = vrot.lane.b32.xlu1 %v1786_v40, %s3797_s5 }
 0xbe9   : > { %v1847_v53 = vpop.xlane.xlu0 %1846 }
 0xbea   : > { %3126 = vrcp.f32 %v1847_v53 }
 0xbeb   : > { %3128 = vpow2.f32 %v2186_v55 }
 0xbf5   : > { %1964 = vrot.lane.b32.xlu0 %v1786_v40, %s3795_s22  ;;  %s3799_s22 = smov 8  }
 0xbf7   : > { %v3127_v56 = vpop.eup %3126 }
 0xbf8   : > { %v1849_v57 = vmul.f32 %v3127_v56, %v3121_v37  ;;  %v3129_v59 = vpop.eup %3128  ;;  %v2759_v56 = vld [vmem:[%s3789_s4 + $0x4] ss:$0 sm:$0xff] }
 0xbf9   : > { %v2188_v60 = vsel %vm995_vm2, %v3129_v59, 0.0 }
 0xbfa   : > { %v1850_v58 = vpack.c.bf16 %v1849_v57, %v1849_v57 }
 0xbfc   : > { %2957 = vmatmul.mubr.msk.bf16.vlgmr.msra.gmra.mxu0 %vm995_vm2, %v1850_v58  ;;  %v2760_v58 = vld [vmem:[%s3745_s6 + $0x4] ss:$0 sm:$0xff] }
 0xbfd   : > { %2968 = vmatprep.mubr.msk.bf16.mxu0 %vm3183_vm1, %v3182_v23 }
 0xc08   : > { %2189 = vadd.xlane.f32.xlu1 %v2188_v60 }
 0xc19   : > { %2194 = vrot.lane.b32.xlu1 %v1786_v40, %s3796_s23  ;;  %s3800_s23 = smov 16   ;;  %v2753_v40 = vld [vmem:[%s3753_s14] ss:$0 sm:$0xff] }
 0xc5c   : > { %v1959_v61 = vpop.xlane.xlu1 %1958 }
 0xc5d   : > { %3130 = vrcp.f32 %v1959_v61 }
 0xc60   : > { %v2080_v4 = vpop.permute.xlu1 %2079 }
 0xc61   : > { %v2085_v6 = vsel %vm1854_vm7, %v2080_v4, 0 }
 0xc68   : > { %v2075_v62 = vpop.xlane.xlu0 %2074 }
 0xc69   : > { %3132 = vrcp.f32 %v2075_v62 }
 0xc6a   : > { %v3131_v63 = vpop.eup %3130 }
 0xc6b   : > { %v1961_v0 = vmul.f32 %v3131_v63, %v3123_v47 }
 0xc6c   : > { %v1965_v1 = vpop.permute.xlu0 %1964 }
 0xc6d   : > { %v1970_v2 = vsel %vm1854_vm7, %v1965_v1, 0  ;;  %v1962_v5 = vpack.c.bf16 %v1961_v0, %v1961_v0 }
 0xc6e   : > { %2967 = vmatpush3.bf16.msra.mxu0 %v1970_v2 }
 0xc6f   : > { %2978 = vmatprep.subr.bf16.mxu0 %v3182_v23 }
 0xc71   : > { %2969 = vmatmul.mubr.msk.bf16.vlgmr.msra.gmra.mxu0 %vm995_vm2, %v1962_v5  ;;  %v3088_v5 = vld [vmem:[%s3754_s15 + $0x8] sm:$0xff]  }
 0xc72   : > { %2979 = vmatpush3.bf16.msra.mxu0 %v2085_v6  ;;  %2980 = vmatprep.mubr.msk.bf16.mxu0 %vm3183_vm1, %v3182_v23 }
 0xc73   : > { %2990 = vmatprep.subr.bf16.mxu0 %v3182_v23 }
 0xc76   : > { %v3133_v7 = vpop.eup %3132 }
 0xc77   : > { %v2077_v8 = vmul.f32 %v3133_v7, %v3125_v50 }
 0xc79   : > { %v2078_v9 = vpack.c.bf16 %v2077_v8, %v2077_v8 }
 0xc7b   : > { %2981 = vmatmul.mubr.msk.bf16.vlgmr.msra.gmra.mxu0 %vm995_vm2, %v2078_v9 }
 0xc7c   : > { %2992 = vmatprep.mubr.msk.bf16.mxu0 %vm3183_vm1, %v3182_v23 }
 0xc91   : > { %v2190_v10 = vpop.xlane.xlu1 %2189 }
 0xc92   : > { %3134 = vrcp.f32 %v2190_v10  ;;  %v2763_v10 = vld [vmem:[%s3789_s4 + $0x2] ss:$0 sm:$0xff] }
 0xc95   : > { %v2195_v11 = vpop.permute.xlu1 %2194 }
 0xc96   : > { %v2200_v13 = vsel %vm1854_vm7, %v2195_v11, 0 }
 0xc97   : > { %2991 = vmatpush3.bf16.msra.mxu0 %v2200_v13  ;;  %v2764_v13 = vld [vmem:[%s3745_s6 + $0x2] ss:$0 sm:$0xff] }
 0xc98   : > { %3004 = vmatprep.subr.bf16.mxu0 %v3182_v23 }
 0xc9f   : > { %v3135_v14 = vpop.eup %3134 }
 0xca0   : > { %v2192_v15 = vmul.f32 %v3135_v14, %v3129_v59 }
 0xca2   : > { %v2193_v16 = vpack.c.bf16 %v2192_v15, %v2192_v15 }
 0xca4   : > { %2993 = vmatmul.mubr.msk.bf16.vlgmr.msra.gmra.mxu0 %vm995_vm2, %v2193_v16 }
 0xca5   : > { %3008 = vmatprep.mubr.msk.bf16.mxu0 %vm3183_vm1, %v3182_v23  ;;  %3005 = vmatpush3.bf16.msra.mxu0 %v3088_v5 }
 0xca6   : > { %3006 = vmatprep.subr.bf16.mxu0 %v3182_v23 }
 0xcbc   : > { %v1892_v17 = vpop.f32.mrf.mxu0 }
 0xcbd   : > { %1898 = vst.msk [vmem:[#allocation2] sm:$0xff] %vm995_vm2, %v1892_v17  ;;  %v2765_v17 = vld [vmem:[%s3755_s16] ss:$0 sm:$0xff] }
 0xcbe   : > { %v2958_v18 = vpop.f32.mrf.mxu0 }
 0xcc0   : > { %v1895_v19 = vpop.f32.mrf.mxu0 }
 0xcc2   : > { %v2959_v3 = vpop.f32.mrf.mxu0 }
 0xd31   : > { %v2006_v20 = vpop.f32.mrf.mxu0 }
 0xd32   : > { %2013 = vrot.lane.b32.xlu1 %v2006_v20, %s3799_s22  ;;  %s705_s22 = sadd.s32 %s2675_s26, %s3815_s2 }
 0xd33   : > { %v2970_v21 = vpop.f32.mrf.mxu0  ;;  %s2676_s7 = sshll.u32 %s705_s22, 3 }
 0xd35   : > { %v2009_v22 = vpop.f32.mrf.mxu0 }
 0xd37   : > { %v2971_v24 = vpop.f32.mrf.mxu0 }
 0xd3b   : > { %v2121_v25 = vpop.f32.mrf.mxu0 }
 0xd3c   : > { %2128 = vrot.lane.b32.xlu0 %v2121_v25, %s3800_s23 }
 0xd3d   : > { %v2982_v26 = vpop.f32.mrf.mxu0 }
 0xd3f   : > { %v2124_v27 = vpop.f32.mrf.mxu0 }
 0xd41   : > { %v2983_v28 = vpop.f32.mrf.mxu0 }
 0xd64   : > { %v2236_v31 = vpop.f32.mrf.mxu0 }
 0xd65   : > { %2243 = vrot.lane.b32.xlu1 %v2236_v31, %s3801_s27  ;;  %v3091_v31 = vld [vmem:[%s3758_s19 + $0x10] sm:$0xff]   ;;  %s707_s27 = scalar_lea.vmem %s3760_s21, %s2676_s7 }
 0xd66   : > { %v2994_v32 = vpop.f32.mrf.mxu0 }
 0xd67   : > { %v3092_v32 = vld [vmem:[%s3758_s19 + $0x8] sm:$0xff]  }
 0xd68   : > { %v2239_v33 = vpop.f32.mrf.mxu0 }
 0xd69   : > { %v3093_v33 = vld [vmem:[%s3758_s19] sm:$0xff]  }
 0xd6a   : > { %v2995_v34 = vpop.f32.mrf.mxu0 }
 0xda4   : > { %v2014_v35 = vpop.permute.xlu1 %2013 }
 0xda5   : > { %2016 = vst.msk [vmem:[#allocation2] sm:$0xff] %vm1214_vm4, %v2014_v35 }
 0xdae   : > { %v2129_v36 = vpop.permute.xlu0 %2128 }
 0xdaf   : > { %2131 = vst.msk [vmem:[#allocation2] sm:$0xff] %vm1328_vm5, %v2129_v36 }
 0xdd7   : > { %v2244_v37 = vpop.permute.xlu1 %2243 }
 0xdd8   : > { %2246 = vst.msk [vmem:[#allocation2] sm:$0xff] %vm1442_vm6, %v2244_v37 }
 0xddf   : > { %v2247_v38 = vld [vmem:[#allocation2] sm:$0xff] }
 0xde0   : > { %v2248_v39 = vpack.c.bf16 %v2247_v38, %v2247_v38  ;;  %v2769_v38 = vld [vmem:[%s3756_s17] ss:$0 sm:$0xff] }
 0xde2   : > { %3001 = vmatmul.mubr.msk.bf16.vlgmr.msra.gmra.mxu1 %vm722_vm0, %v2248_v39 }
 0xde3   : > { %3020 = vmatprep.mubr.msk.bf16.mxu1 %vm3183_vm1, %v3182_v23  ;;  %3013 = vmatpush3.bf16.msra.mxu1 %v3090_v30 }
 0xde4   : > { %3014 = vmatprep.subr.bf16.mxu1 %v3182_v23 }
 0xde7   : > { %3015 = vmatpush3.bf16.msra.mxu1 %v3091_v31 }
 0xde8   : > { %3016 = vmatprep.subr.bf16.mxu1 %v3182_v23 }
 0xdeb   : > { %3017 = vmatpush3.bf16.msra.mxu1 %v3092_v32 }
 0xdec   : > { %3018 = vmatprep.subr.bf16.mxu1 %v3182_v23  ;;  %v2771_v23 = vld [vmem:[%s3759_s20] ss:$0 sm:$0xff] }
 0xdef   : > { %3019 = vmatpush3.bf16.msra.mxu1 %v3093_v33 }
 0xea2   : > { %v2309_v41 = vpop.f32.mrf.mxu1 }
 0xea3   : > { %v2310_v42 = vadd.f32 %v2753_v40, %v2309_v41  ;;  %v2770_v40 = vld [vmem:[%s3757_s18] ss:$0 sm:$0xff] }
 0xea4   : > { %v3002_v43 = vpop.f32.mrf.mxu1 }
 0xea5   : > { %v2319_v44 = vsel %vm722_vm0, %v2310_v42, 0.0 }
 0xea6   : > { %2320 = vadd.xlane.f32.xlu0 %v2319_v44  ;;  %v2312_v49 = vpop.f32.mrf.mxu1 }
 0xea8   : > { %v3003_v45 = vpop.f32.mrf.mxu1 }
 0xf2f   : > { %v2321_v46 = vpop.xlane.xlu0 %2320 }
 0xf30   : > { %v2322_v47 = vmul.f32 0.03125, %v2321_v46 }
 0xf32   : > { %v2323_v48 = vsub.f32 %v2310_v42, %v2322_v47 }
 0xf34   : > { %v2324_v50 = vmul.f32 %v2323_v48, %v2323_v48 }
 0xf36   : > { %v2325_v51 = vsel %vm722_vm0, %v2324_v50, 0.0 }
 0xf37   : > { %2326 = vadd.xlane.f32.xlu1 %v2325_v51 }
 0xfc0   : > { %v2327_v52 = vpop.xlane.xlu1 %2326 }
 0xfc1   : > { %v2328_v53 = vmul.f32 0.03125, %v2327_v52 }
 0xfc3   : > { %v2329_v54 = vadd.f32 1e-05, %v2328_v53 }
 0xfc5   : > { %3136 = vrsqrt.f32 %v2329_v54 }
 0xfd2   : > { %v3137_v55 = vpop.eup %3136 }
 0xfd3   : > { %v2331_v57 = vmul.f32 %v3137_v55, %v2323_v48 }
 0xfd5   : > { %v2338_v59 = vmul.f32 %v2759_v56, %v2331_v57 }
 0xfd7   : > { %v2345_v60 = vadd.f32 %v2760_v58, %v2338_v59 }
 0xfd9   : > { %v3666_v61 = vadd.f32 %v2345_v60, %v3508_v12  ;;  %v3089_v12 = vld [vmem:[%s3754_s15] sm:$0xff]  }
 0xfda   : > { %3007 = vmatpush3.bf16.msra.mxu0 %v3089_v12 }
 0xfdb   : > { %v2351_v62 = vsel %vm722_vm0, %v3666_v61, 0.0 }
 0xfdc   : > { %2352 = vadd.xlane.f32.xlu0 %v2351_v62 }
0x1065   : > { %v2353_v63 = vpop.xlane.xlu0 %2352 }
0x1066   : > { %v2354_v0 = vmul.f32 0.03125, %v2353_v63 }
0x1068   : > { %v2355_v1 = vsub.f32 %v3666_v61, %v2354_v0 }
0x106a   : > { %v2356_v2 = vmul.f32 %v2355_v1, %v2355_v1 }
0x106c   : > { %v2357_v4 = vsel %vm722_vm0, %v2356_v2, 0.0 }
0x106d   : > { %2358 = vadd.xlane.f32.xlu0 %v2357_v4 }
0x10f6   : > { %v2359_v6 = vpop.xlane.xlu0 %2358 }
0x10f7   : > { %v2360_v7 = vmul.f32 0.03125, %v2359_v6 }
0x10f9   : > { %v2361_v8 = vadd.f32 1e-05, %v2360_v7 }
0x10fb   : > { %3138 = vrsqrt.f32 %v2361_v8 }
0x1108   : > { %v3139_v9 = vpop.eup %3138 }
0x1109   : > { %v2363_v11 = vmul.f32 %v3139_v9, %v2355_v1 }
0x110b   : > { %v2370_v14 = vmul.f32 %v2763_v10, %v2363_v11 }
0x110d   : > { %v2377_v15 = vadd.f32 %v2764_v13, %v2370_v14 }
0x110f   : > { %v2378_v16 = vpack.c.bf16 %v2377_v15, %v2377_v15 }
0x1111   : > { %3009 = vmatmul.mubr.msk.bf16.vlgmr.msra.gmra.mxu0 %vm722_vm0, %v2378_v16 }
0x11d1   : > { %v2439_v18 = vpop.f32.mrf.mxu0 }
0x11d2   : > { %v2440_v19 = vadd.f32 %v2765_v17, %v2439_v18 }
0x11d3   : > { %v3010_v3 = vpop.f32.mrf.mxu0 }
0x11d4   : > { %v2445_v20 = vmax.f32 %v2440_v19, 0.0 }
0x11d5   : > { %v2442_v21 = vpop.f32.mrf.mxu0 }
0x11d6   : > { %v2449_v22 = vsel %vm2448_vm8, %v2445_v20, 0.0 }
0x11d7   : > { %2450 = vadd.xlane.f32.xlu0 %v2449_v22  ;;  %v3011_v24 = vpop.f32.mrf.mxu0 }
0x1260   : > { %v2451_v25 = vpop.xlane.xlu0 %2450 }
0x1261   : > { %v2453_v26 = vmul.f32 0.015625, %v2451_v25 }
0x1263   : > { %v2454_v27 = vsub.f32 %v2445_v20, %v2453_v26 }
0x1265   : > { %v2455_v28 = vmul.f32 %v2454_v27, %v2454_v27 }
0x1267   : > { %v2456_v29 = vsel %vm2448_vm8, %v2455_v28, 0.0 }
0x1268   : > { %2457 = vadd.xlane.f32.xlu1 %v2456_v29 }
0x12f1   : > { %v2458_v34 = vpop.xlane.xlu1 %2457 }
0x12f2   : > { %v2459_v35 = vmul.f32 0.015625, %v2458_v34 }
0x12f4   : > { %v2460_v36 = vadd.f32 1e-05, %v2459_v35 }
0x12f6   : > { %3140 = vrsqrt.f32 %v2460_v36 }
0x1303   : > { %v3141_v37 = vpop.eup %3140 }
0x1304   : > { %v2462_v39 = vmul.f32 %v3141_v37, %v2454_v27 }
0x1306   : > { %v2469_v41 = vmul.f32 %v2769_v38, %v2462_v39 }
0x1308   : > { %v2476_v42 = vadd.f32 %v2770_v40, %v2469_v41 }
0x130a   : > { %v2477_v43 = vpack.c.bf16 %v2476_v42, %v2476_v42 }
0x130c   : > { %3021 = vmatmul.mubr.msk.bf16.vlgmr.msra.gmra.mxu1 %vm2448_vm8, %v2477_v43 }
0x13cc   : > { %v2554_v44 = vpop.f32.mrf.mxu1 }
0x13cd   : > { %v2555_v49 = vadd.f32 %v2771_v23, %v2554_v44 }
0x13ce   : > { %v3022_v45 = vpop.f32.mrf.mxu1 }
0x13cf   : > { %v2560_v46 = vadd.f32 %v2555_v49, %v3666_v61 }
0x13d0   : > { %v2557_v47 = vpop.f32.mrf.mxu1 }
0x13d1   : > { %2561 = vst.msk [vmem:[%s707_s27] sm:$0xff] %vm722_vm0, %v2560_v46 }
0x13d2   : > { %v3023_v48 = vpop.f32.mrf.mxu1 }
0x13d3 PF: > { %s31_s3 = sadd.s32 1, %s3180_s3   ;;  %s3802_s2 = sld [smem:[#allocation3_spill]] }
0x13d4   : > { %p28_p7 = scmp.ge.s32.totalorder %s31_s3, 6   ;;  %s3803_s25 = sld [smem:[#allocation4_spill]] }
0x13d5   : > { %s3804_s26 = sld [smem:[#allocation5_spill]] }
0x13d6   : > { %s3805_s27 = sld [smem:[#allocation6_spill]]  ;;  %30 = sbr.rel (!%p28_p7) target bundleno = 9 (0x9), region = 158 }

</bundles_post_ra>
